<compile_context>
chip_gen: v7x
topology: tpu7x:2x2x1
jax: 0.10.0
libtpu: 0.0.40
codegen_flags: <defaults>
</compile_context>

<pallas_src>
import functools

import jax
import jax.numpy as jnp
from jax.experimental import pallas as pl
from jax.experimental.pallas import tpu as pltpu

_MIB = 1 << 20


def _round_up(x, m):
    return -(-x // m) * m


def _vmem_limit(block_bytes):
    # ~2x for Pallas double-buffering plus headroom, clamped to a budget that is valid on
    # every generation (v5e/v6e default scoped limit 16/32 MiB, v7x has 64 MiB physical).
    return int(min(max(2 * block_bytes + 4 * _MIB, 16 * _MIB), 32 * _MIB))


# --------------------------------------------------------------------------------------
# K1: per-batch attention + feed-forward + diverter gates
# --------------------------------------------------------------------------------------
def _attn_ffn_kernel(
    outs_ref, mem_ref, mask_ref, bias_ref,
    wqT_ref, bq_ref, wkT_ref, bk_ref, wvT_ref, bv_ref, woT_ref, bo_ref,
    g1_ref, be1_ref, w1T_ref, bf1_ref, w2T_ref, bf2_ref, g2_ref, be2_ref,
    wdaT_ref, wdbT_ref, bdiv_ref,
    outs3_ref, gen_ref, copyvals_ref,
    *, scaling: float, ln_eps: float,
):
    f32 = jnp.float32
    bf16 = jnp.bfloat16
    x = outs_ref[0]                       # (T, E) f32 decoder states for this batch element
    m = mem_ref[0]                        # (S, E) bf16 encoder memory
    x_bf = x.astype(bf16)

    # ---- alignment layer: single-head attention (num_heads == 1) ----
    q = (jnp.dot(x_bf, wqT_ref[...], preferred_element_type=f32) + bq_ref[...]) * scaling
    k = jnp.dot(m, wkT_ref[...], preferred_element_type=f32) + bk_ref[...]
    v = jnp.dot(m, wvT_ref[...], preferred_element_type=f32) + bv_ref[...]

    scores = jax.lax.dot_general(q.astype(bf16), k.astype(bf16),
                                 (((1,), (1,)), ((), ())),
                                 preferred_element_type=f32)          # (T, S)
    scores = scores + bias_ref[0]                                     # additive attn bias
    # Finite fill (-1e30, not -inf): a fully padded key row softmaxes to a finite
    # distribution instead of NaN.
    scores = jnp.where(mask_ref[0] > 0.5, -1e30, scores)

    smax = jnp.max(scores, axis=-1, keepdims=True)
    p = jnp.exp(scores - smax)
    aw = p / jnp.sum(p, axis=-1, keepdims=True)                       # alignment weights (T, S)

    ctx = jnp.dot(aw.astype(bf16), v.astype(bf16), preferred_element_type=f32)
    attn = jnp.dot(ctx.astype(bf16), woT_ref[...], preferred_element_type=f32) + bo_ref[...]

    def layer_norm(z, g, b):
        mu = jnp.mean(z, axis=-1, keepdims=True)
        zc = z - mu
        var = jnp.mean(zc * zc, axis=-1, keepdims=True)
        return zc * jax.lax.rsqrt(var + ln_eps) * g + b

    # TODO(synk): dropout is identity (eval mode); training-mode RNG dropout not ported.
    outs_ln = layer_norm(x + attn, g1_ref[...], be1_ref[...])
    h = jnp.maximum(
        jnp.dot(outs_ln.astype(bf16), w1T_ref[...], preferred_element_type=f32) + bf1_ref[...],
        0.0)
    ff = jnp.dot(h.astype(bf16), w2T_ref[...], preferred_element_type=f32) + bf2_ref[...]
    outs3 = layer_norm(ff, g2_ref[...], be2_ref[...])
    # Same LayerNorm parameters reused on attn alone (mirrors self.alignment_layer_norm).
    attn_norm = layer_norm(attn, g1_ref[...], be1_ref[...])

    # ---- diverter: two skinny MXU matmuls instead of four XLU lane reductions ----
    dlog = (jnp.dot(outs3.astype(bf16), wdaT_ref[...], preferred_element_type=f32)
            + jnp.dot(attn_norm.astype(bf16), wdbT_ref[...], preferred_element_type=f32)
            + bdiv_ref[...])                                          # (T, 2): [gen, copy]
    dmax = jnp.max(dlog, axis=-1, keepdims=True)
    de = jnp.exp(dlog - dmax)
    gates = de / jnp.sum(de, axis=-1, keepdims=True)
    gen_gate = gates[:, 0:1]
    copy_gate = gates[:, 1:2]

    outs3_ref[0] = outs3.astype(outs3_ref.dtype)
    gen_ref[0] = gen_gate.astype(gen_ref.dtype)
    copyvals_ref[0] = (copy_gate * aw).astype(copyvals_ref.dtype)


# --------------------------------------------------------------------------------------
# K2: row-wise logsumexp of outs3 @ wembT over vocab tiles (online, VMEM scratch)
# --------------------------------------------------------------------------------------
def _vocab_lse_kernel(outs3_ref, wembT_ref, lse_ref, m_sc, l_sc, *, v_total: int, v_tile: int):
    vt = pl.program_id(1)

    @pl.when(vt == 0)
    def _():
        m_sc[...] = jnp.full_like(m_sc, -1e30)
        l_sc[...] = jnp.zeros_like(l_sc)

    x = outs3_ref[...]                                    # (BB, T, E) bf16
    bb, t, e = x.shape
    logits = jnp.dot(x.reshape(bb * t, e), wembT_ref[...],
                     preferred_element_type=jnp.float32)  # (BB*T, TV)
    if v_total % v_tile != 0:                             # mask padded vocab columns (static)
        col = vt * v_tile + jax.lax.broadcasted_iota(jnp.int32, logits.shape, 1)
        logits = jnp.where(col < v_total, logits, -1e30)

    m_prev = m_sc[...]
    m_new = jnp.maximum(m_prev, jnp.max(logits, axis=-1, keepdims=True))
    l_sc[...] = (l_sc[...] * jnp.exp(m_prev - m_new)
                 + jnp.sum(jnp.exp(logits - m_new), axis=-1, keepdims=True))
    m_sc[...] = m_new

    @pl.when(vt == pl.num_programs(1) - 1)
    def _():
        lse_ref[...] = (m_sc[...] + jnp.log(l_sc[...])).reshape(lse_ref.shape)


# --------------------------------------------------------------------------------------
# K3: per-vocab-tile probabilities + copy scatter + log
# --------------------------------------------------------------------------------------
def _vocab_prob_kernel(outs3_ref, gen_ref, lse_ref, copyvals_ref, copyseq_ref, wembT_ref,
                       out_ref, *, v_total: int, v_tile: int):
    vt = pl.program_id(0)
    f32 = jnp.float32
    bf16 = jnp.bfloat16

    x = outs3_ref[...]                                    # (BB, T, E) bf16
    bb, t, e = x.shape
    s = copyvals_ref.shape[2]

    logits = jnp.dot(x.reshape(bb * t, e), wembT_ref[...], preferred_element_type=f32)
    if v_total % v_tile != 0:                             # padded vocab columns -> ~0 prob
        col_r = vt * v_tile + jax.lax.broadcasted_iota(jnp.int32, logits.shape, 1)
        logits = jnp.where(col_r < v_total, logits, -1e30)

    gen = gen_ref[...].reshape(bb * t, 1)
    lse = lse_ref[...].reshape(bb * t, 1)
    probs = gen * jnp.exp(logits - lse)                   # gen_gate * softmax(logits)

    # scatter_add(-1, copy_seq, copy_gate * alignment_weight) restricted to this V tile:
    # one (T,S) @ (S,TV) one-hot matmul per batch element (0/1 is exact in bf16).
    col = vt * v_tile + jax.lax.broadcasted_iota(jnp.int32, (s, v_tile), 1)
    copy_rows = []
    for i in range(bb):                                   # static unroll over the batch block
        ids = copyseq_ref[i]                              # (S, 1) int32
        one_hot = (col == ids).astype(bf16)               # (S, TV)
        copy_rows.append(jnp.dot(copyvals_ref[i], one_hot, preferred_element_type=f32))
    probs = probs + jnp.concatenate(copy_rows, axis=0)

    out_ref[...] = jnp.log(probs + 1e-7).reshape(out_ref.shape)


# --------------------------------------------------------------------------------------
# wrapper
# --------------------------------------------------------------------------------------
def copy_token_decoder_forward(outs, mem, mem_mask, mem_bias, copy_seq, params, *, v_tile=None):
    """outs: (T,B,E), mem: (S,B,E), mem_mask/mem_bias/copy_seq: (S,B).  Returns (T,B,V)."""
    T, B, E = outs.shape
    S = mem.shape[0]
    V = params["emb_weight"].shape[0]
    Fd = params["fc1_w"].shape[0]
    f32, bf16 = jnp.float32, jnp.bfloat16

    # ----- layout glue: batch-major activations -----
    outs_b = jnp.transpose(outs, (1, 0, 2)).astype(f32)           # (B, T, E)
    mem_b = jnp.transpose(mem, (1, 0, 2)).astype(bf16)            # (B, S, E) matmul operand only
    mask_b = jnp.transpose(mem_mask.astype(f32), (1, 0)).reshape(B, 1, S)
    bias_b = jnp.transpose(mem_bias.astype(f32), (1, 0)).reshape(B, 1, S)
    copy_b = jnp.transpose(copy_seq.astype(jnp.int32), (1, 0)).reshape(B, S, 1)

    # ----- parameters: bf16 for MXU operands, f32 for biases / layernorm / softmax math -----
    ipw = params["in_proj_w"].astype(f32)
    ipb = params["in_proj_b"].astype(f32)
    wqT = ipw[0:E, :].T.astype(bf16)
    wkT = ipw[E:2 * E, :].T.astype(bf16)
    wvT = ipw[2 * E:3 * E, :].T.astype(bf16)
    bq = ipb[0:E].reshape(1, E)
    bk = ipb[E:2 * E].reshape(1, E)
    bv = ipb[2 * E:3 * E].reshape(1, E)
    woT = params["out_proj_w"].astype(f32).T.astype(bf16)
    bo = params["out_proj_b"].astype(f32).reshape(1, E)
    g1 = params["ln1_g"].astype(f32).reshape(1, E)
    be1 = params["ln1_b"].astype(f32).reshape(1, E)
    w1T = params["fc1_w"].astype(f32).T.astype(bf16)              # (E, F)
    bf1 = params["fc1_b"].astype(f32).reshape(1, Fd)
    w2T = params["fc2_w"].astype(f32).T.astype(bf16)              # (F, E)
    bf2 = params["fc2_b"].astype(f32).reshape(1, E)
    g2 = params["ln2_g"].astype(f32).reshape(1, E)
    be2 = params["ln2_b"].astype(f32).reshape(1, E)
    div_w = params["div_w"].astype(f32)                           # (2, 2E): row0 gen, row1 copy
    wdaT = div_w[:, :E].T.astype(bf16)                            # (E, 2)
    wdbT = div_w[:, E:].T.astype(bf16)                            # (E, 2)
    bdiv = params["div_b"].astype(f32).reshape(1, 2)
    wembT = params["emb_weight"].astype(f32).T.astype(bf16)       # (E, V) tied embedding

    # ----- tiling -----
    if v_tile is None:
        v_tile = 1024                                             # 1-2K lanes per tile
    v_tile = max(128, (int(v_tile) // 128) * 128)
    v_tile = min(v_tile, _round_up(V, 128))
    v_pad = _round_up(V, v_tile)
    if v_pad != V:
        wembT = jnp.pad(wembT, ((0, 0), (0, v_pad - V)))
    nv = v_pad // v_tile

    bb = max(1, min(B, max(1, 256 // max(T, 1))))                 # ~256 rows per vocab matmul
    while B % bb != 0:
        bb -= 1
    nb = B // bb

    scaling = float(E) ** -0.5                                    # head_dim == embed_dim (1 head)

    # ---------------- K1: attention / FFN / diverter ----------------
    k1 = functools.partial(_attn_ffn_kernel, scaling=scaling, ln_eps=1e-5)

    def _full(shape):
        return pl.BlockSpec(shape, lambda b: (0,) * len(shape))

    blk1 = (T * E * 4 + S * E * 2 + 2 * S * 4
            + (4 * E * E + E * Fd + Fd * E + 4 * E) * 2
            + (8 * E + Fd + 2) * 4
            + T * E * 2 + T * 4 + T * S * 2)

    outs3, gen_gate, copy_vals = pl.pallas_call(
        k1,
        out_shape=(
            jax.ShapeDtypeStruct((B, T, E), bf16),      # outs3 (vocab-matmul operand)
            jax.ShapeDtypeStruct((B, T, 1), f32),       # gen_gate
            jax.ShapeDtypeStruct((B, T, S), bf16),      # copy_gate * alignment weights
        ),
        grid_spec=pltpu.PrefetchScalarGridSpec(
            num_scalar_prefetch=0,
            grid=(B,),
            in_specs=[
                pl.BlockSpec((1, T, E), lambda b: (b, 0, 0)),    # outs
                pl.BlockSpec((1, S, E), lambda b: (b, 0, 0)),    # mem
                pl.BlockSpec((1, 1, S), lambda b: (b, 0, 0)),    # mem_mask
                pl.BlockSpec((1, 1, S), lambda b: (b, 0, 0)),    # mem_bias
                _full((E, E)), _full((1, E)),                    # wqT, bq
                _full((E, E)), _full((1, E)),                    # wkT, bk
                _full((E, E)), _full((1, E)),                    # wvT, bv
                _full((E, E)), _full((1, E)),                    # woT, bo
                _full((1, E)), _full((1, E)),                    # ln1 gamma, beta
                _full((E, Fd)), _full((1, Fd)),                  # fc1
                _full((Fd, E)), _full((1, E)),                   # fc2
                _full((1, E)), _full((1, E)),                    # ln2 gamma, beta
                _full((E, 2)), _full((E, 2)), _full((1, 2)),     # diverter halves + bias
            ],
            out_specs=[
                pl.BlockSpec((1, T, E), lambda b: (b, 0, 0)),
                pl.BlockSpec((1, T, 1), lambda b: (b, 0, 0)),
                pl.BlockSpec((1, T, S), lambda b: (b, 0, 0)),
            ],
        ),
        compiler_params=pltpu.CompilerParams(
            dimension_semantics=("parallel",),          # batch independent -> both TCs on v7x
            vmem_limit_bytes=_vmem_limit(blk1)),
    )(outs_b, mem_b, mask_b, bias_b,
      wqT, bq, wkT, bk, wvT, bv, woT, bo,
      g1, be1, w1T, bf1, w2T, bf2, g2, be2,
      wdaT, wdbT, bdiv)

    # ---------------- K2: logsumexp over the vocab (online, V innermost) ----------------
    k2 = functools.partial(_vocab_lse_kernel, v_total=V, v_tile=v_tile)
    blk2 = bb * T * E * 2 + E * v_tile * 2 + bb * T * 4 + 2 * bb * T * 4

    lse = pl.pallas_call(
        k2,
        out_shape=jax.ShapeDtypeStruct((B, T, 1), f32),
        grid_spec=pltpu.PrefetchScalarGridSpec(
            num_scalar_prefetch=0,
            grid=(nb, nv),
            in_specs=[
                pl.BlockSpec((bb, T, E), lambda rb, vt: (rb, 0, 0)),
                pl.BlockSpec((E, v_tile), lambda rb, vt: (0, vt)),
            ],
            out_specs=pl.BlockSpec((bb, T, 1), lambda rb, vt: (rb, 0, 0)),
            scratch_shapes=[pltpu.VMEM((bb * T, 1), f32),       # running row max
                            pltpu.VMEM((bb * T, 1), f32)],      # running row sumexp
        ),
        compiler_params=pltpu.CompilerParams(
            dimension_semantics=("parallel", "arbitrary"),
            vmem_limit_bytes=_vmem_limit(blk2)),
    )(outs3, wembT)

    # ---------------- K3: per-tile probs + copy scatter + log (V-tile outer) ----------------
    k3 = functools.partial(_vocab_prob_kernel, v_total=V, v_tile=v_tile)
    blk3 = (bb * T * E * 2 + 2 * bb * T * 4 + bb * T * S * 2 + bb * S * 4
            + E * v_tile * 2 + bb * T * v_tile * 4)

    lprobs_b = pl.pallas_call(
        k3,
        out_shape=jax.ShapeDtypeStruct((B, T, v_pad), f32),
        grid_spec=pltpu.PrefetchScalarGridSpec(
            num_scalar_prefetch=0,
            grid=(nv, nb),                              # V OUTER: wemb tile reused across batch
            in_specs=[
                pl.BlockSpec((bb, T, E), lambda vt, rb: (rb, 0, 0)),    # outs3
                pl.BlockSpec((bb, T, 1), lambda vt, rb: (rb, 0, 0)),    # gen_gate
                pl.BlockSpec((bb, T, 1), lambda vt, rb: (rb, 0, 0)),    # lse
                pl.BlockSpec((bb, T, S), lambda vt, rb: (rb, 0, 0)),    # copy_gate * aw
                pl.BlockSpec((bb, S, 1), lambda vt, rb: (rb, 0, 0)),    # copy_seq ids
                pl.BlockSpec((E, v_tile), lambda vt, rb: (0, vt)),      # wembT tile
            ],
            out_specs=pl.BlockSpec((bb, T, v_tile), lambda vt, rb: (rb, 0, vt)),
        ),
        compiler_params=pltpu.CompilerParams(
            dimension_semantics=("parallel", "parallel"),
            vmem_limit_bytes=_vmem_limit(blk3)),
    )(outs3, gen_gate, lse, copy_vals, copy_b, wembT)

    if v_pad != V:
        lprobs_b = lprobs_b[:, :, :V]
    # Final layout transpose back to the PyTorch (T, B, V) convention.  Consumers that can
    # work batch-major should consume lprobs_b directly and skip this extra HBM round-trip.
    return jnp.transpose(lprobs_b, (1, 0, 2))


if __name__ == "__main__":
    key = jax.random.PRNGKey(0)
    T, S, B, E, Fd, V = 8, 16, 2, 32, 64, 4096
    keys = jax.random.split(key, 10)

    # Deterministic synthetic parameters following the module's reset_parameters():
    # weights ~ N(0, 0.02), biases = 0, LayerNorm gamma=1 / beta=0, output proj tied to embedding.
    params = {
        "emb_weight": 0.02 * jax.random.normal(keys[0], (V, E), jnp.float32),
        "in_proj_w": 0.02 * jax.random.normal(keys[1], (3 * E, E), jnp.float32),
        "in_proj_b": jnp.zeros((3 * E,), jnp.float32),
        "out_proj_w": 0.02 * jax.random.normal(keys[2], (E, E), jnp.float32),
        "out_proj_b": jnp.zeros((E,), jnp.float32),
        "ln1_g": jnp.ones((E,), jnp.float32),
        "ln1_b": jnp.zeros((E,), jnp.float32),
        "fc1_w": 0.02 * jax.random.normal(keys[3], (Fd, E), jnp.float32),
        "fc1_b": jnp.zeros((Fd,), jnp.float32),
        "fc2_w": 0.02 * jax.random.normal(keys[4], (E, Fd), jnp.float32),
        "fc2_b": jnp.zeros((E,), jnp.float32),
        "ln2_g": jnp.ones((E,), jnp.float32),
        "ln2_b": jnp.zeros((E,), jnp.float32),
        "div_w": 0.02 * jax.random.normal(keys[5], (2, 2 * E), jnp.float32),
        "div_b": jnp.zeros((2,), jnp.float32),
    }

    outs = jax.random.normal(keys[6], (T, B, E), jnp.float32)
    mem = jax.random.normal(keys[7], (S, B, E), jnp.float32)
    # pad the last 3 memory positions of batch element 1
    mem_mask = jnp.zeros((S, B), jnp.bool_).at[S - 3:, 1].set(True)
    mem_bias = 0.1 * jax.random.normal(keys[8], (S, B), jnp.float32)
    copy_seq = jax.random.randint(keys[9], (S, B), 0, V, jnp.int32)

    lprobs = copy_token_decoder_forward(outs, mem, mem_mask, mem_bias, copy_seq, params,
                                        v_tile=1024)   # 4 vocab tiles -> exercises the online LSE
    jax.block_until_ready(lprobs)
    assert lprobs.shape == (T, B, V)

    # sanity: probability mass (gen + copy) sums to ~1 (+ V * 1e-7 from the log epsilon)
    psum = jnp.sum(jnp.exp(lprobs), axis=-1)
    assert bool(jnp.all(jnp.isfinite(lprobs)))
    assert bool(jnp.allclose(psum, 1.0 + V * 1e-7, atol=2e-2))
    print("KERNEL_OK")
</pallas_src>

<mosaic_0001>
module attributes {stable_mosaic.version = 11 : i64} {
  func.func @_attn_ffn_kernel(%arg0: i32, %arg1: memref<1x8x32xf32, #tpu.memory_space<vmem>>, %arg2: memref<1x16x32xbf16, #tpu.memory_space<vmem>>, %arg3: memref<1x1x16xf32, #tpu.memory_space<vmem>>, %arg4: memref<1x1x16xf32, #tpu.memory_space<vmem>>, %arg5: memref<32x32xbf16, #tpu.memory_space<vmem>>, %arg6: memref<1x32xf32, #tpu.memory_space<vmem>>, %arg7: memref<32x32xbf16, #tpu.memory_space<vmem>>, %arg8: memref<1x32xf32, #tpu.memory_space<vmem>>, %arg9: memref<32x32xbf16, #tpu.memory_space<vmem>>, %arg10: memref<1x32xf32, #tpu.memory_space<vmem>>, %arg11: memref<32x32xbf16, #tpu.memory_space<vmem>>, %arg12: memref<1x32xf32, #tpu.memory_space<vmem>>, %arg13: memref<1x32xf32, #tpu.memory_space<vmem>>, %arg14: memref<1x32xf32, #tpu.memory_space<vmem>>, %arg15: memref<32x64xbf16, #tpu.memory_space<vmem>>, %arg16: memref<1x64xf32, #tpu.memory_space<vmem>>, %arg17: memref<64x32xbf16, #tpu.memory_space<vmem>>, %arg18: memref<1x32xf32, #tpu.memory_space<vmem>>, %arg19: memref<1x32xf32, #tpu.memory_space<vmem>>, %arg20: memref<1x32xf32, #tpu.memory_space<vmem>>, %arg21: memref<32x2xbf16, #tpu.memory_space<vmem>>, %arg22: memref<32x2xbf16, #tpu.memory_space<vmem>>, %arg23: memref<1x2xf32, #tpu.memory_space<vmem>>, %arg24: memref<1x8x32xbf16, #tpu.memory_space<vmem>>, %arg25: memref<1x8x1xf32, #tpu.memory_space<vmem>>, %arg26: memref<1x8x16xbf16, #tpu.memory_space<vmem>>) attributes {dimension_semantics = [#tpu.dimension_semantics<parallel>], iteration_bounds = array<i64: 2>, scalar_prefetch = 0 : i64, scratch_operands = 0 : i64, tpu.core_type = #tpu.core_type<tc>, window_params = [{transform_indices = @transform_0, window_bounds = array<i64: 1, 8, 32>}, {transform_indices = @transform_1, window_bounds = array<i64: 1, 16, 32>}, {transform_indices = @transform_2, window_bounds = array<i64: 1, 1, 16>}, {transform_indices = @transform_3, window_bounds = array<i64: 1, 1, 16>}, {pipeline_mode = #tpu.pipeline_mode<synchronous>, transform_indices = @transform_4, window_bounds = array<i64: 32, 32>}, {pipeline_mode = #tpu.pipeline_mode<synchronous>, transform_indices = @transform_5, window_bounds = array<i64: 1, 32>}, {pipeline_mode = #tpu.pipeline_mode<synchronous>, transform_indices = @transform_6, window_bounds = array<i64: 32, 32>}, {pipeline_mode = #tpu.pipeline_mode<synchronous>, transform_indices = @transform_7, window_bounds = array<i64: 1, 32>}, {pipeline_mode = #tpu.pipeline_mode<synchronous>, transform_indices = @transform_8, window_bounds = array<i64: 32, 32>}, {pipeline_mode = #tpu.pipeline_mode<synchronous>, transform_indices = @transform_9, window_bounds = array<i64: 1, 32>}, {pipeline_mode = #tpu.pipeline_mode<synchronous>, transform_indices = @transform_10, window_bounds = array<i64: 32, 32>}, {pipeline_mode = #tpu.pipeline_mode<synchronous>, transform_indices = @transform_11, window_bounds = array<i64: 1, 32>}, {pipeline_mode = #tpu.pipeline_mode<synchronous>, transform_indices = @transform_12, window_bounds = array<i64: 1, 32>}, {pipeline_mode = #tpu.pipeline_mode<synchronous>, transform_indices = @transform_13, window_bounds = array<i64: 1, 32>}, {pipeline_mode = #tpu.pipeline_mode<synchronous>, transform_indices = @transform_14, window_bounds = array<i64: 32, 64>}, {pipeline_mode = #tpu.pipeline_mode<synchronous>, transform_indices = @transform_15, window_bounds = array<i64: 1, 64>}, {pipeline_mode = #tpu.pipeline_mode<synchronous>, transform_indices = @transform_16, window_bounds = array<i64: 64, 32>}, {pipeline_mode = #tpu.pipeline_mode<synchronous>, transform_indices = @transform_17, window_bounds = array<i64: 1, 32>}, {pipeline_mode = #tpu.pipeline_mode<synchronous>, transform_indices = @transform_18, window_bounds = array<i64: 1, 32>}, {pipeline_mode = #tpu.pipeline_mode<synchronous>, transform_indices = @transform_19, window_bounds = array<i64: 1, 32>}, {pipeline_mode = #tpu.pipeline_mode<synchronous>, transform_indices = @transform_20, window_bounds = array<i64: 32, 2>}, {pipeline_mode = #tpu.pipeline_mode<synchronous>, transform_indices = @transform_21, window_bounds = array<i64: 32, 2>}, {pipeline_mode = #tpu.pipeline_mode<synchronous>, transform_indices = @transform_22, window_bounds = array<i64: 1, 2>}, {transform_indices = @transform_23, window_bounds = array<i64: 1, 8, 32>}, {transform_indices = @transform_24, window_bounds = array<i64: 1, 8, 1>}, {transform_indices = @transform_25, window_bounds = array<i64: 1, 8, 16>}]} {
    %c0 = arith.constant 0 : index
    %c0_0 = arith.constant 0 : index
    %c0_1 = arith.constant 0 : index
    %0 = vector.load %arg1[%c0, %c0_0, %c0_1] : memref<1x8x32xf32, #tpu.memory_space<vmem>>, vector<1x8x32xf32>
    %1 = vector.shape_cast %0 : vector<1x8x32xf32> to vector<8x32xf32>
    %c0_2 = arith.constant 0 : index
    %c0_3 = arith.constant 0 : index
    %c0_4 = arith.constant 0 : index
    %2 = vector.load %arg2[%c0_2, %c0_3, %c0_4] : memref<1x16x32xbf16, #tpu.memory_space<vmem>>, vector<1x16x32xbf16>
    %3 = vector.shape_cast %2 : vector<1x16x32xbf16> to vector<16x32xbf16>
    %4 = arith.truncf %1 : vector<8x32xf32> to vector<8x32xbf16>
    %c0_5 = arith.constant 0 : index
    %c0_6 = arith.constant 0 : index
    %5 = vector.load %arg5[%c0_5, %c0_6] : memref<32x32xbf16, #tpu.memory_space<vmem>>, vector<32x32xbf16>
    %cst = arith.constant dense<0.000000e+00> : vector<8x32xf32>
    %6 = tpu.matmul %4, %5, %cst {dimension_numbers = #tpu.dot_dimension_numbers<[1], [0], [0], [1], [0, 0, 1, 1], [], []>} : vector<8x32xbf16>, vector<32x32xbf16>, vector<8x32xf32> -> vector<8x32xf32>
    %c0_7 = arith.constant 0 : index
    %c0_8 = arith.constant 0 : index
    %7 = vector.load %arg6[%c0_7, %c0_8] : memref<1x32xf32, #tpu.memory_space<vmem>>, vector<1x32xf32>
    %8 = vector.broadcast %7 : vector<1x32xf32> to vector<8x32xf32>
    %9 = arith.addf %6, %8 : vector<8x32xf32>
    %cst_9 = arith.constant 0.176776692 : f32
    %10 = vector.broadcast %cst_9 : f32 to vector<8x32xf32>
    %11 = arith.mulf %9, %10 : vector<8x32xf32>
    %c0_10 = arith.constant 0 : index
    %c0_11 = arith.constant 0 : index
    %12 = vector.load %arg7[%c0_10, %c0_11] : memref<32x32xbf16, #tpu.memory_space<vmem>>, vector<32x32xbf16>
    %cst_12 = arith.constant dense<0.000000e+00> : vector<16x32xf32>
    %13 = tpu.matmul %3, %12, %cst_12 {dimension_numbers = #tpu.dot_dimension_numbers<[1], [0], [0], [1], [0, 0, 1, 1], [], []>} : vector<16x32xbf16>, vector<32x32xbf16>, vector<16x32xf32> -> vector<16x32xf32>
    %c0_13 = arith.constant 0 : index
    %c0_14 = arith.constant 0 : index
    %14 = vector.load %arg8[%c0_13, %c0_14] : memref<1x32xf32, #tpu.memory_space<vmem>>, vector<1x32xf32>
    %15 = vector.broadcast %14 : vector<1x32xf32> to vector<16x32xf32>
    %16 = arith.addf %13, %15 : vector<16x32xf32>
    %c0_15 = arith.constant 0 : index
    %c0_16 = arith.constant 0 : index
    %17 = vector.load %arg9[%c0_15, %c0_16] : memref<32x32xbf16, #tpu.memory_space<vmem>>, vector<32x32xbf16>
    %cst_17 = arith.constant dense<0.000000e+00> : vector<16x32xf32>
    %18 = tpu.matmul %3, %17, %cst_17 {dimension_numbers = #tpu.dot_dimension_numbers<[1], [0], [0], [1], [0, 0, 1, 1], [], []>} : vector<16x32xbf16>, vector<32x32xbf16>, vector<16x32xf32> -> vector<16x32xf32>
    %c0_18 = arith.constant 0 : index
    %c0_19 = arith.constant 0 : index
    %19 = vector.load %arg10[%c0_18, %c0_19] : memref<1x32xf32, #tpu.memory_space<vmem>>, vector<1x32xf32>
    %20 = vector.broadcast %19 : vector<1x32xf32> to vector<16x32xf32>
    %21 = arith.addf %18, %20 : vector<16x32xf32>
    %22 = arith.truncf %11 : vector<8x32xf32> to vector<8x32xbf16>
    %23 = arith.truncf %16 : vector<16x32xf32> to vector<16x32xbf16>
    %cst_20 = arith.constant dense<0.000000e+00> : vector<8x16xf32>
    %24 = tpu.matmul %22, %23, %cst_20 {dimension_numbers = #tpu.dot_dimension_numbers<[1], [1], [0], [0], [0, 0, 1, 0], [], []>} : vector<8x32xbf16>, vector<16x32xbf16>, vector<8x16xf32> -> vector<8x16xf32>
    %c0_21 = arith.constant 0 : index
    %c0_22 = arith.constant 0 : index
    %c0_23 = arith.constant 0 : index
    %25 = vector.load %arg4[%c0_21, %c0_22, %c0_23] : memref<1x1x16xf32, #tpu.memory_space<vmem>>, vector<1x1x16xf32>
    %26 = vector.shape_cast %25 : vector<1x1x16xf32> to vector<1x16xf32>
    %27 = vector.broadcast %26 : vector<1x16xf32> to vector<8x16xf32>
    %28 = arith.addf %24, %27 : vector<8x16xf32>
    %c0_24 = arith.constant 0 : index
    %c0_25 = arith.constant 0 : index
    %c0_26 = arith.constant 0 : index
    %29 = vector.load %arg3[%c0_24, %c0_25, %c0_26] : memref<1x1x16xf32, #tpu.memory_space<vmem>>, vector<1x1x16xf32>
    %30 = vector.shape_cast %29 : vector<1x1x16xf32> to vector<1x16xf32>
    %cst_27 = arith.constant 5.000000e-01 : f32
    %31 = vector.broadcast %cst_27 : f32 to vector<1x16xf32>
    %32 = arith.cmpf ogt, %30, %31 : vector<1x16xf32>
    %cst_28 = arith.constant -1.000000e+30 : f32
    %33 = vector.shape_cast %32 : vector<1x16xi1> to vector<1x16xi1>
    %34 = vector.broadcast %33 : vector<1x16xi1> to vector<8x16xi1>
    %35 = vector.broadcast %cst_28 : f32 to vector<8x16xf32>
    %36 = arith.select %34, %35, %28 : vector<8x16xi1>, vector<8x16xf32>
    %cst_29 = arith.constant dense<0xFF800000> : vector<8xf32>
    %37 = vector.multi_reduction <maximumf>, %36, %cst_29 [1] : vector<8x16xf32> to vector<8xf32>
    %38 = vector.shape_cast %37 : vector<8xf32> to vector<8x1xf32>
    %39 = vector.broadcast %38 : vector<8x1xf32> to vector<8x16xf32>
    %40 = arith.subf %36, %39 : vector<8x16xf32>
    %41 = math.exp %40 : vector<8x16xf32>
    %cst_30 = arith.constant dense<0.000000e+00> : vector<8xf32>
    %42 = vector.multi_reduction <add>, %41, %cst_30 [1] : vector<8x16xf32> to vector<8xf32>
    %43 = vector.shape_cast %42 : vector<8xf32> to vector<8x1xf32>
    %44 = vector.broadcast %43 : vector<8x1xf32> to vector<8x16xf32>
    %45 = arith.divf %41, %44 : vector<8x16xf32>
    %46 = arith.truncf %45 : vector<8x16xf32> to vector<8x16xbf16>
    %47 = arith.truncf %21 : vector<16x32xf32> to vector<16x32xbf16>
    %cst_31 = arith.constant dense<0.000000e+00> : vector<8x32xf32>
    %48 = tpu.matmul %46, %47, %cst_31 {dimension_numbers = #tpu.dot_dimension_numbers<[1], [0], [0], [1], [0, 0, 1, 1], [], []>} : vector<8x16xbf16>, vector<16x32xbf16>, vector<8x32xf32> -> vector<8x32xf32>
    %49 = arith.truncf %48 : vector<8x32xf32> to vector<8x32xbf16>
    %c0_32 = arith.constant 0 : index
    %c0_33 = arith.constant 0 : index
    %50 = vector.load %arg11[%c0_32, %c0_33] : memref<32x32xbf16, #tpu.memory_space<vmem>>, vector<32x32xbf16>
    %cst_34 = arith.constant dense<0.000000e+00> : vector<8x32xf32>
    %51 = tpu.matmul %49, %50, %cst_34 {dimension_numbers = #tpu.dot_dimension_numbers<[1], [0], [0], [1], [0, 0, 1, 1], [], []>} : vector<8x32xbf16>, vector<32x32xbf16>, vector<8x32xf32> -> vector<8x32xf32>
    %c0_35 = arith.constant 0 : index
    %c0_36 = arith.constant 0 : index
    %52 = vector.load %arg12[%c0_35, %c0_36] : memref<1x32xf32, #tpu.memory_space<vmem>>, vector<1x32xf32>
    %53 = vector.broadcast %52 : vector<1x32xf32> to vector<8x32xf32>
    %54 = arith.addf %51, %53 : vector<8x32xf32>
    %55 = arith.addf %1, %54 : vector<8x32xf32>
    %c0_37 = arith.constant 0 : index
    %c0_38 = arith.constant 0 : index
    %56 = vector.load %arg13[%c0_37, %c0_38] : memref<1x32xf32, #tpu.memory_space<vmem>>, vector<1x32xf32>
    %c0_39 = arith.constant 0 : index
    %c0_40 = arith.constant 0 : index
    %57 = vector.load %arg14[%c0_39, %c0_40] : memref<1x32xf32, #tpu.memory_space<vmem>>, vector<1x32xf32>
    %cst_41 = arith.constant dense<0.000000e+00> : vector<8xf32>
    %58 = vector.multi_reduction <add>, %55, %cst_41 [1] : vector<8x32xf32> to vector<8xf32>
    %59 = vector.shape_cast %58 : vector<8xf32> to vector<8x1xf32>
    %cst_42 = arith.constant 3.200000e+01 : f32
    %60 = vector.broadcast %cst_42 : f32 to vector<8x1xf32>
    %61 = arith.divf %59, %60 : vector<8x1xf32>
    %62 = vector.broadcast %61 : vector<8x1xf32> to vector<8x32xf32>
    %63 = arith.subf %55, %62 : vector<8x32xf32>
    %64 = arith.mulf %63, %63 : vector<8x32xf32>
    %cst_43 = arith.constant dense<0.000000e+00> : vector<8xf32>
    %65 = vector.multi_reduction <add>, %64, %cst_43 [1] : vector<8x32xf32> to vector<8xf32>
    %66 = vector.shape_cast %65 : vector<8xf32> to vector<8x1xf32>
    %cst_44 = arith.constant 3.200000e+01 : f32
    %67 = vector.broadcast %cst_44 : f32 to vector<8x1xf32>
    %68 = arith.divf %66, %67 : vector<8x1xf32>
    %cst_45 = arith.constant 9.99999974E-6 : f32
    %69 = vector.broadcast %cst_45 : f32 to vector<8x1xf32>
    %70 = arith.addf %68, %69 : vector<8x1xf32>
    %71 = math.rsqrt %70 : vector<8x1xf32>
    %72 = vector.broadcast %71 : vector<8x1xf32> to vector<8x32xf32>
    %73 = arith.mulf %63, %72 : vector<8x32xf32>
    %74 = vector.broadcast %56 : vector<1x32xf32> to vector<8x32xf32>
    %75 = arith.mulf %73, %74 : vector<8x32xf32>
    %76 = vector.broadcast %57 : vector<1x32xf32> to vector<8x32xf32>
    %77 = arith.addf %75, %76 : vector<8x32xf32>
    %78 = arith.truncf %77 : vector<8x32xf32> to vector<8x32xbf16>
    %c0_46 = arith.constant 0 : index
    %c0_47 = arith.constant 0 : index
    %79 = vector.load %arg15[%c0_46, %c0_47] : memref<32x64xbf16, #tpu.memory_space<vmem>>, vector<32x64xbf16>
    %cst_48 = arith.constant dense<0.000000e+00> : vector<8x64xf32>
    %80 = tpu.matmul %78, %79, %cst_48 {dimension_numbers = #tpu.dot_dimension_numbers<[1], [0], [0], [1], [0, 0, 1, 1], [], []>} : vector<8x32xbf16>, vector<32x64xbf16>, vector<8x64xf32> -> vector<8x64xf32>
    %c0_49 = arith.constant 0 : index
    %c0_50 = arith.constant 0 : index
    %81 = vector.load %arg16[%c0_49, %c0_50] : memref<1x64xf32, #tpu.memory_space<vmem>>, vector<1x64xf32>
    %82 = vector.broadcast %81 : vector<1x64xf32> to vector<8x64xf32>
    %83 = arith.addf %80, %82 : vector<8x64xf32>
    %cst_51 = arith.constant 0.000000e+00 : f32
    %84 = vector.broadcast %cst_51 : f32 to vector<8x64xf32>
    %85 = arith.maximumf %83, %84 : vector<8x64xf32>
    %86 = arith.truncf %85 : vector<8x64xf32> to vector<8x64xbf16>
    %c0_52 = arith.constant 0 : index
    %c0_53 = arith.constant 0 : index
    %87 = vector.load %arg17[%c0_52, %c0_53] : memref<64x32xbf16, #tpu.memory_space<vmem>>, vector<64x32xbf16>
    %cst_54 = arith.constant dense<0.000000e+00> : vector<8x32xf32>
    %88 = tpu.matmul %86, %87, %cst_54 {dimension_numbers = #tpu.dot_dimension_numbers<[1], [0], [0], [1], [0, 0, 1, 1], [], []>} : vector<8x64xbf16>, vector<64x32xbf16>, vector<8x32xf32> -> vector<8x32xf32>
    %c0_55 = arith.constant 0 : index
    %c0_56 = arith.constant 0 : index
    %89 = vector.load %arg18[%c0_55, %c0_56] : memref<1x32xf32, #tpu.memory_space<vmem>>, vector<1x32xf32>
    %90 = vector.broadcast %89 : vector<1x32xf32> to vector<8x32xf32>
    %91 = arith.addf %88, %90 : vector<8x32xf32>
    %c0_57 = arith.constant 0 : index
    %c0_58 = arith.constant 0 : index
    %92 = vector.load %arg19[%c0_57, %c0_58] : memref<1x32xf32, #tpu.memory_space<vmem>>, vector<1x32xf32>
    %c0_59 = arith.constant 0 : index
    %c0_60 = arith.constant 0 : index
    %93 = vector.load %arg20[%c0_59, %c0_60] : memref<1x32xf32, #tpu.memory_space<vmem>>, vector<1x32xf32>
    %cst_61 = arith.constant dense<0.000000e+00> : vector<8xf32>
    %94 = vector.multi_reduction <add>, %91, %cst_61 [1] : vector<8x32xf32> to vector<8xf32>
    %95 = vector.shape_cast %94 : vector<8xf32> to vector<8x1xf32>
    %cst_62 = arith.constant 3.200000e+01 : f32
    %96 = vector.broadcast %cst_62 : f32 to vector<8x1xf32>
    %97 = arith.divf %95, %96 : vector<8x1xf32>
    %98 = vector.broadcast %97 : vector<8x1xf32> to vector<8x32xf32>
    %99 = arith.subf %91, %98 : vector<8x32xf32>
    %100 = arith.mulf %99, %99 : vector<8x32xf32>
    %cst_63 = arith.constant dense<0.000000e+00> : vector<8xf32>
    %101 = vector.multi_reduction <add>, %100, %cst_63 [1] : vector<8x32xf32> to vector<8xf32>
    %102 = vector.shape_cast %101 : vector<8xf32> to vector<8x1xf32>
    %cst_64 = arith.constant 3.200000e+01 : f32
    %103 = vector.broadcast %cst_64 : f32 to vector<8x1xf32>
    %104 = arith.divf %102, %103 : vector<8x1xf32>
    %cst_65 = arith.constant 9.99999974E-6 : f32
    %105 = vector.broadcast %cst_65 : f32 to vector<8x1xf32>
    %106 = arith.addf %104, %105 : vector<8x1xf32>
    %107 = math.rsqrt %106 : vector<8x1xf32>
    %108 = vector.broadcast %107 : vector<8x1xf32> to vector<8x32xf32>
    %109 = arith.mulf %99, %108 : vector<8x32xf32>
    %110 = vector.broadcast %92 : vector<1x32xf32> to vector<8x32xf32>
    %111 = arith.mulf %109, %110 : vector<8x32xf32>
    %112 = vector.broadcast %93 : vector<1x32xf32> to vector<8x32xf32>
    %113 = arith.addf %111, %112 : vector<8x32xf32>
    %c0_66 = arith.constant 0 : index
    %c0_67 = arith.constant 0 : index
    %114 = vector.load %arg13[%c0_66, %c0_67] : memref<1x32xf32, #tpu.memory_space<vmem>>, vector<1x32xf32>
    %c0_68 = arith.constant 0 : index
    %c0_69 = arith.constant 0 : index
    %115 = vector.load %arg14[%c0_68, %c0_69] : memref<1x32xf32, #tpu.memory_space<vmem>>, vector<1x32xf32>
    %cst_70 = arith.constant dense<0.000000e+00> : vector<8xf32>
    %116 = vector.multi_reduction <add>, %54, %cst_70 [1] : vector<8x32xf32> to vector<8xf32>
    %117 = vector.shape_cast %116 : vector<8xf32> to vector<8x1xf32>
    %cst_71 = arith.constant 3.200000e+01 : f32
    %118 = vector.broadcast %cst_71 : f32 to vector<8x1xf32>
    %119 = arith.divf %117, %118 : vector<8x1xf32>
    %120 = vector.broadcast %119 : vector<8x1xf32> to vector<8x32xf32>
    %121 = arith.subf %54, %120 : vector<8x32xf32>
    %122 = arith.mulf %121, %121 : vector<8x32xf32>
    %cst_72 = arith.constant dense<0.000000e+00> : vector<8xf32>
    %123 = vector.multi_reduction <add>, %122, %cst_72 [1] : vector<8x32xf32> to vector<8xf32>
    %124 = vector.shape_cast %123 : vector<8xf32> to vector<8x1xf32>
    %cst_73 = arith.constant 3.200000e+01 : f32
    %125 = vector.broadcast %cst_73 : f32 to vector<8x1xf32>
    %126 = arith.divf %124, %125 : vector<8x1xf32>
    %cst_74 = arith.constant 9.99999974E-6 : f32
    %127 = vector.broadcast %cst_74 : f32 to vector<8x1xf32>
    %128 = arith.addf %126, %127 : vector<8x1xf32>
    %129 = math.rsqrt %128 : vector<8x1xf32>
    %130 = vector.broadcast %129 : vector<8x1xf32> to vector<8x32xf32>
    %131 = arith.mulf %121, %130 : vector<8x32xf32>
    %132 = vector.broadcast %114 : vector<1x32xf32> to vector<8x32xf32>
    %133 = arith.mulf %131, %132 : vector<8x32xf32>
    %134 = vector.broadcast %115 : vector<1x32xf32> to vector<8x32xf32>
    %135 = arith.addf %133, %134 : vector<8x32xf32>
    %136 = arith.truncf %113 : vector<8x32xf32> to vector<8x32xbf16>
    %c0_75 = arith.constant 0 : index
    %c0_76 = arith.constant 0 : index
    %137 = vector.load %arg21[%c0_75, %c0_76] : memref<32x2xbf16, #tpu.memory_space<vmem>>, vector<32x2xbf16>
    %cst_77 = arith.constant dense<0.000000e+00> : vector<8x2xf32>
    %138 = tpu.matmul %136, %137, %cst_77 {dimension_numbers = #tpu.dot_dimension_numbers<[1], [0], [0], [1], [0, 0, 1, 1], [], []>} : vector<8x32xbf16>, vector<32x2xbf16>, vector<8x2xf32> -> vector<8x2xf32>
    %139 = arith.truncf %135 : vector<8x32xf32> to vector<8x32xbf16>
    %c0_78 = arith.constant 0 : index
    %c0_79 = arith.constant 0 : index
    %140 = vector.load %arg22[%c0_78, %c0_79] : memref<32x2xbf16, #tpu.memory_space<vmem>>, vector<32x2xbf16>
    %cst_80 = arith.constant dense<0.000000e+00> : vector<8x2xf32>
    %141 = tpu.matmul %139, %140, %cst_80 {dimension_numbers = #tpu.dot_dimension_numbers<[1], [0], [0], [1], [0, 0, 1, 1], [], []>} : vector<8x32xbf16>, vector<32x2xbf16>, vector<8x2xf32> -> vector<8x2xf32>
    %142 = arith.addf %138, %141 : vector<8x2xf32>
    %c0_81 = arith.constant 0 : index
    %c0_82 = arith.constant 0 : index
    %143 = vector.load %arg23[%c0_81, %c0_82] : memref<1x2xf32, #tpu.memory_space<vmem>>, vector<1x2xf32>
    %144 = vector.broadcast %143 : vector<1x2xf32> to vector<8x2xf32>
    %145 = arith.addf %142, %144 : vector<8x2xf32>
    %cst_83 = arith.constant dense<0xFF800000> : vector<8xf32>
    %146 = vector.multi_reduction <maximumf>, %145, %cst_83 [1] : vector<8x2xf32> to vector<8xf32>
    %147 = vector.shape_cast %146 : vector<8xf32> to vector<8x1xf32>
    %148 = vector.broadcast %147 : vector<8x1xf32> to vector<8x2xf32>
    %149 = arith.subf %145, %148 : vector<8x2xf32>
    %150 = math.exp %149 : vector<8x2xf32>
    %cst_84 = arith.constant dense<0.000000e+00> : vector<8xf32>
    %151 = vector.multi_reduction <add>, %150, %cst_84 [1] : vector<8x2xf32> to vector<8xf32>
    %152 = vector.shape_cast %151 : vector<8xf32> to vector<8x1xf32>
    %153 = vector.broadcast %152 : vector<8x1xf32> to vector<8x2xf32>
    %154 = arith.divf %150, %153 : vector<8x2xf32>
    %155 = vector.extract_strided_slice %154 {offsets = [0, 0], sizes = [8, 1], strides = [1, 1]} : vector<8x2xf32> to vector<8x1xf32>
    %156 = vector.extract_strided_slice %154 {offsets = [0, 1], sizes = [8, 1], strides = [1, 1]} : vector<8x2xf32> to vector<8x1xf32>
    %157 = arith.truncf %113 : vector<8x32xf32> to vector<8x32xbf16>
    %c0_85 = arith.constant 0 : index
    %c0_86 = arith.constant 0 : index
    %c0_87 = arith.constant 0 : index
    %158 = vector.load %arg24[%c0_85, %c0_86, %c0_87] : memref<1x8x32xbf16, #tpu.memory_space<vmem>>, vector<1x8x32xbf16>
    %159 = vector.shape_cast %158 : vector<1x8x32xbf16> to vector<8x32xbf16>
    %160 = vector.shape_cast %157 : vector<8x32xbf16> to vector<1x8x32xbf16>
    tpu.vector_store %arg24[%c0_85, %c0_86, %c0_87], %160 {strides = array<i32>} : memref<1x8x32xbf16, #tpu.memory_space<vmem>>, vector<1x8x32xbf16>,
    %c0_88 = arith.constant 0 : index
    %c0_89 = arith.constant 0 : index
    %c0_90 = arith.constant 0 : index
    %161 = vector.load %arg25[%c0_88, %c0_89, %c0_90] : memref<1x8x1xf32, #tpu.memory_space<vmem>>, vector<1x8x1xf32>
    %162 = vector.shape_cast %161 : vector<1x8x1xf32> to vector<8x1xf32>
    %163 = vector.shape_cast %155 : vector<8x1xf32> to vector<1x8x1xf32>
    tpu.vector_store %arg25[%c0_88, %c0_89, %c0_90], %163 {strides = array<i32>} : memref<1x8x1xf32, #tpu.memory_space<vmem>>, vector<1x8x1xf32>,
    %164 = vector.broadcast %156 : vector<8x1xf32> to vector<8x16xf32>
    %165 = arith.mulf %164, %45 : vector<8x16xf32>
    %166 = arith.truncf %165 : vector<8x16xf32> to vector<8x16xbf16>
    %c0_91 = arith.constant 0 : index
    %c0_92 = arith.constant 0 : index
    %c0_93 = arith.constant 0 : index
    %167 = vector.load %arg26[%c0_91, %c0_92, %c0_93] : memref<1x8x16xbf16, #tpu.memory_space<vmem>>, vector<1x8x16xbf16>
    %168 = vector.shape_cast %167 : vector<1x8x16xbf16> to vector<8x16xbf16>
    %169 = vector.shape_cast %166 : vector<8x16xbf16> to vector<1x8x16xbf16>
    tpu.vector_store %arg26[%c0_91, %c0_92, %c0_93], %169 {strides = array<i32>} : memref<1x8x16xbf16, #tpu.memory_space<vmem>>, vector<1x8x16xbf16>,
    return
  }
  func.func @transform_0(%arg0: i32) -> (i32, i32, i32) {
    %c0_i32 = arith.constant 0 : i32
    %c0_i32_0 = arith.constant 0 : i32
    %c0_i32_1 = arith.constant 0 : i32
    return %arg0, %c0_i32, %c0_i32_0 : i32, i32, i32
  }
  func.func @transform_1(%arg0: i32) -> (i32, i32, i32) {
    %c0_i32 = arith.constant 0 : i32
    %c0_i32_0 = arith.constant 0 : i32
    %c0_i32_1 = arith.constant 0 : i32
    return %arg0, %c0_i32, %c0_i32_0 : i32, i32, i32
  }
  func.func @transform_2(%arg0: i32) -> (i32, i32, i32) {
    %c0_i32 = arith.constant 0 : i32
    %c0_i32_0 = arith.constant 0 : i32
    %c0_i32_1 = arith.constant 0 : i32
    return %arg0, %c0_i32, %c0_i32_0 : i32, i32, i32
  }
  func.func @transform_3(%arg0: i32) -> (i32, i32, i32) {
    %c0_i32 = arith.constant 0 : i32
    %c0_i32_0 = arith.constant 0 : i32
    %c0_i32_1 = arith.constant 0 : i32
    return %arg0, %c0_i32, %c0_i32_0 : i32, i32, i32
  }
  func.func @transform_4(%arg0: i32) -> (i32, i32) {
    %c0_i32 = arith.constant 0 : i32
    %c0_i32_0 = arith.constant 0 : i32
    %c0_i32_1 = arith.constant 0 : i32
    return %c0_i32, %c0_i32_0 : i32, i32
  }
  func.func @transform_5(%arg0: i32) -> (i32, i32) {
    %c0_i32 = arith.constant 0 : i32
    %c0_i32_0 = arith.constant 0 : i32
    %c0_i32_1 = arith.constant 0 : i32
    return %c0_i32, %c0_i32_0 : i32, i32
  }
  func.func @transform_6(%arg0: i32) -> (i32, i32) {
    %c0_i32 = arith.constant 0 : i32
    %c0_i32_0 = arith.constant 0 : i32
    %c0_i32_1 = arith.constant 0 : i32
    return %c0_i32, %c0_i32_0 : i32, i32
  }
  func.func @transform_7(%arg0: i32) -> (i32, i32) {
    %c0_i32 = arith.constant 0 : i32
    %c0_i32_0 = arith.constant 0 : i32
    %c0_i32_1 = arith.constant 0 : i32
    return %c0_i32, %c0_i32_0 : i32, i32
  }
  func.func @transform_8(%arg0: i32) -> (i32, i32) {
    %c0_i32 = arith.constant 0 : i32
    %c0_i32_0 = arith.constant 0 : i32
    %c0_i32_1 = arith.constant 0 : i32
    return %c0_i32, %c0_i32_0 : i32, i32
  }
  func.func @transform_9(%arg0: i32) -> (i32, i32) {
    %c0_i32 = arith.constant 0 : i32
    %c0_i32_0 = arith.constant 0 : i32
    %c0_i32_1 = arith.constant 0 : i32
    return %c0_i32, %c0_i32_0 : i32, i32
  }
  func.func @transform_10(%arg0: i32) -> (i32, i32) {
    %c0_i32 = arith.constant 0 : i32
    %c0_i32_0 = arith.constant 0 : i32
    %c0_i32_1 = arith.constant 0 : i32
    return %c0_i32, %c0_i32_0 : i32, i32
  }
  func.func @transform_11(%arg0: i32) -> (i32, i32) {
    %c0_i32 = arith.constant 0 : i32
    %c0_i32_0 = arith.constant 0 : i32
    %c0_i32_1 = arith.constant 0 : i32
    return %c0_i32, %c0_i32_0 : i32, i32
  }
  func.func @transform_12(%arg0: i32) -> (i32, i32) {
    %c0_i32 = arith.constant 0 : i32
    %c0_i32_0 = arith.constant 0 : i32
    %c0_i32_1 = arith.constant 0 : i32
    return %c0_i32, %c0_i32_0 : i32, i32
  }
  func.func @transform_13(%arg0: i32) -> (i32, i32) {
    %c0_i32 = arith.constant 0 : i32
    %c0_i32_0 = arith.constant 0 : i32
    %c0_i32_1 = arith.constant 0 : i32
    return %c0_i32, %c0_i32_0 : i32, i32
  }
  func.func @transform_14(%arg0: i32) -> (i32, i32) {
    %c0_i32 = arith.constant 0 : i32
    %c0_i32_0 = arith.constant 0 : i32
    %c0_i32_1 = arith.constant 0 : i32
    return %c0_i32, %c0_i32_0 : i32, i32
  }
  func.func @transform_15(%arg0: i32) -> (i32, i32) {
    %c0_i32 = arith.constant 0 : i32
    %c0_i32_0 = arith.constant 0 : i32
    %c0_i32_1 = arith.constant 0 : i32
    return %c0_i32, %c0_i32_0 : i32, i32
  }
  func.func @transform_16(%arg0: i32) -> (i32, i32) {
    %c0_i32 = arith.constant 0 : i32
    %c0_i32_0 = arith.constant 0 : i32
    %c0_i32_1 = arith.constant 0 : i32
    return %c0_i32, %c0_i32_0 : i32, i32
  }
  func.func @transform_17(%arg0: i32) -> (i32, i32) {
    %c0_i32 = arith.constant 0 : i32
    %c0_i32_0 = arith.constant 0 : i32
    %c0_i32_1 = arith.constant 0 : i32
    return %c0_i32, %c0_i32_0 : i32, i32
  }
  func.func @transform_18(%arg0: i32) -> (i32, i32) {
    %c0_i32 = arith.constant 0 : i32
    %c0_i32_0 = arith.constant 0 : i32
    %c0_i32_1 = arith.constant 0 : i32
    return %c0_i32, %c0_i32_0 : i32, i32
  }
  func.func @transform_19(%arg0: i32) -> (i32, i32) {
    %c0_i32 = arith.constant 0 : i32
    %c0_i32_0 = arith.constant 0 : i32
    %c0_i32_1 = arith.constant 0 : i32
    return %c0_i32, %c0_i32_0 : i32, i32
  }
  func.func @transform_20(%arg0: i32) -> (i32, i32) {
    %c0_i32 = arith.constant 0 : i32
    %c0_i32_0 = arith.constant 0 : i32
    %c0_i32_1 = arith.constant 0 : i32
    return %c0_i32, %c0_i32_0 : i32, i32
  }
  func.func @transform_21(%arg0: i32) -> (i32, i32) {
    %c0_i32 = arith.constant 0 : i32
    %c0_i32_0 = arith.constant 0 : i32
    %c0_i32_1 = arith.constant 0 : i32
    return %c0_i32, %c0_i32_0 : i32, i32
  }
  func.func @transform_22(%arg0: i32) -> (i32, i32) {
    %c0_i32 = arith.constant 0 : i32
    %c0_i32_0 = arith.constant 0 : i32
    %c0_i32_1 = arith.constant 0 : i32
    return %c0_i32, %c0_i32_0 : i32, i32
  }
  func.func @transform_23(%arg0: i32) -> (i32, i32, i32) {
    %c0_i32 = arith.constant 0 : i32
    %c0_i32_0 = arith.constant 0 : i32
    %c0_i32_1 = arith.constant 0 : i32
    return %arg0, %c0_i32, %c0_i32_0 : i32, i32, i32
  }
  func.func @transform_24(%arg0: i32) -> (i32, i32, i32) {
    %c0_i32 = arith.constant 0 : i32
    %c0_i32_0 = arith.constant 0 : i32
    %c0_i32_1 = arith.constant 0 : i32
    return %arg0, %c0_i32, %c0_i32_0 : i32, i32, i32
  }
  func.func @transform_25(%arg0: i32) -> (i32, i32, i32) {
    %c0_i32 = arith.constant 0 : i32
    %c0_i32_0 = arith.constant 0 : i32
    %c0_i32_1 = arith.constant 0 : i32
    return %arg0, %c0_i32, %c0_i32_0 : i32, i32, i32
  }
}

</mosaic_0001>

<bundles_post_ra>
// kernel: tpu_custom_call.1
= control target key start
LH: loop header
LB: loop body
LE: loop exit
PB: predicated region body
PF: predicated region fallthrough
CT: control target
= control target key end

     0   :  { %s3108_s0 = inlined_call_operand.vmem [shape: f32[2,8,32], index: 0, kind: input, shape index: {}]   ;;  %s3109_s1 = inlined_call_operand.vmem [shape: bf16[2,16,32], index: 1, kind: input, shape index: {}]   ;;  %s3110_s2 = inlined_call_operand.hbm [shape: f32[2,1,16], index: 2, kind: input, shape index: {}]   ;;  %s3111_s3 = inlined_call_operand.hbm [shape: f32[2,1,16], index: 3, kind: input, shape index: {}]   ;;  %s3112_s4 = inlined_call_operand.vmem [shape: bf16[32,32], index: 4, kind: input, shape index: {}]   ;;  %s3113_s5 = inlined_call_operand.hbm [shape: f32[1,32], index: 5, kind: input, shape index: {}]   ;;  %s3114_s6 = inlined_call_operand.vmem [shape: bf16[32,32], index: 6, kind: input, shape index: {}]   ;;  %s3115_s7 = inlined_call_operand.hbm [shape: f32[1,32], index: 7, kind: input, shape index: {}]   ;;  %s3116_s8 = inlined_call_operand.vmem [shape: bf16[32,32], index: 8, kind: input, shape index: {}]   ;;  %s3117_s9 = inlined_call_operand.vmem [shape: f32[1,32], index: 9, kind: input, shape index: {}]   ;;  %s3118_s10 = inlined_call_operand.vmem [shape: bf16[32,32], index: 10, kind: input, shape index: {}]   ;;  %s3119_s11 = inlined_call_operand.vmem [shape: f32[1,32], index: 11, kind: input, shape index: {}]   ;;  %s3120_s12 = inlined_call_operand.vmem [shape: f32[1,32], index: 12, kind: input, shape index: {}]   ;;  %s3121_s13 = inlined_call_operand.hbm [shape: f32[1,32], index: 13, kind: input, shape index: {}]   ;;  %s3122_s14 = inlined_call_operand.vmem [shape: bf16[32,64], index: 14, kind: input, shape index: {}]   ;;  %s3123_s15 = inlined_call_operand.vmem [shape: f32[1,64], index: 15, kind: input, shape index: {}]   ;;  %s3124_s16 = inlined_call_operand.vmem [shape: bf16[64,32], index: 16, kind: input, shape index: {}]   ;;  %s3125_s17 = inlined_call_operand.vmem [shape: f32[1,32], index: 17, kind: input, shape index: {}]   ;;  %s3126_s18 = inlined_call_operand.vmem [shape: f32[1,32], index: 18, kind: input, shape index: {}]   ;;  %s3127_s19 = inlined_call_operand.vmem [shape: f32[1,32], index: 19, kind: input, shape index: {}]   ;;  %s3128_s20 = inlined_call_operand.vmem [shape: bf16[32,2], index: 20, kind: input, shape index: {}]   ;;  %s3129_s21 = inlined_call_operand.vmem [shape: bf16[32,2], index: 21, kind: input, shape index: {}]   ;;  %s3130_s22 = inlined_call_operand.vmem [shape: f32[1,2], index: 22, kind: input, shape index: {}]   ;;  %s3131_s23 = inlined_call_operand.hbm [shape: bf16[2,8,32], index: 23, kind: output, shape index: {0}]   ;;  %s3132_s24 = inlined_call_operand.vmem [shape: f32[2,8,1], index: 24, kind: output, shape index: {1}]   ;;  %s3133_s25 = inlined_call_operand.hbm [shape: bf16[2,8,16], index: 25, kind: output, shape index: {2}]  }
   0x1   :  { %3161 = sst [smem:[#allocation26_spill]] %s3108_s0 }
   0x2   :  { %3162 = sst [smem:[#allocation27_spill]] %s3109_s1 }
   0x3   :  { %3163 = sst [smem:[#allocation28_spill]] %s3110_s2 }
   0x4   :  { %3164 = sst [smem:[#allocation29_spill]] %s3111_s3 }
   0x5   :  { %3165 = sst [smem:[#allocation30_spill]] %s3112_s4 }
   0x6   :  { %3166 = sst [smem:[#allocation31_spill]] %s3113_s5 }
   0x7   :  { %3167 = sst [smem:[#allocation32_spill]] %s3114_s6 }
   0x8   :  { %3168 = sst [smem:[#allocation33_spill]] %s3115_s7 }
   0x9   :  { %3169 = sst [smem:[#allocation34_spill]] %s3116_s8 }
   0xa   :  { %3170 = sst [smem:[#allocation35_spill]] %s3117_s9 }
   0xb   :  { %3171 = sst [smem:[#allocation36_spill]] %s3121_s13 }
   0xc   :  { %3172 = sst [smem:[#allocation37_spill]] %s3126_s18 }
   0xd   :  { %3173 = sst [smem:[#allocation38_spill]] %s3127_s19 }
   0xe   :  { %3174 = sst [smem:[#allocation39_spill]] %s3128_s20 }
   0xf   :  { %3175 = sst [smem:[#allocation40_spill]] %s3130_s22 }
  0x10   :  { %3176 = sst [smem:[#allocation41_spill]] %s3131_s23 }
  0x11   :  { %3177 = sst [smem:[#allocation42_spill]] %s3132_s24 }
  0x12   :  { %3178 = sst [smem:[#allocation43_spill]] %s3133_s25 }
  0x13   :  { %31 = vsyncpa [#allocation3], 0 }
  0x14   :  { %33 = vsyncpa [#allocation3 + $0x1], 0 }
  0x15   :  { %34 = vsyncpa [#allocation6], 0 }
  0x16   :  { %36 = vsyncpa [#allocation6 + $0x1], 0 }
  0x17   :  { %37 = vsyncpa [#allocation9], 0 }
  0x18   :  { %38 = vsyncpa [#allocation4], 0 }
  0x19   :  { %40 = vsyncpa [#allocation4 + $0x1], 0 }
  0x1a   :  { %41 = vsyncpa [#allocation13], 0 }
  0x1b   :  { %43 = vsyncpa [#allocation13 + $0x1], 0  ;;  %s2615_s29 = smov 0   ;;  %s2617_s2 = smov 0  }
  0x1c   :  { %s2619_s6 = smov 0   ;;  %s2621_s30 = smov 0  }
  0x1d LB: > { %3179 = sst [smem:[#allocation20_spill]] %s2460_s29  ;;  %s2636_s7 = sadd.s32 4294967295, %s2472_s30   ;;  %s2472_s30 = sphi %s2621_s30, %s3231_s30   ;;  %s2468_s6 = sphi %s2619_s6, %s3233_s6   ;;  %s2464_s2 = sphi %s2617_s2, %s3235_s2   ;;  %s2460_s29 = sphi %s2615_s29, %s3234_s29  }
  0x1e   : > { %3180 = sst [smem:[#allocation21_spill]] %s2468_s6  ;;  %s1917_s3 = sadd.s32 4294967294, %s2472_s30  }
  0x1f   : > { %p121_p0 = scmp.ne.s32.totalorder %s2464_s2, %s2460_s29  ;;  %p3145_p1 = scmp.eq.s32.totalorder %s2636_s7, 0 }
  0x20   : > { %p576_p3 = scmp.eq.s32.totalorder %s1917_s3, 1  ;;  %p1918_p5 = scmp.ge.s32.totalorder %s2472_s30, 1 }
  0x21   : > { %p2645_p4 = por %p3145_p1, %p121_p0  ;;  %p635_p7 = scmp.lt.s32.totalorder %s2472_s30, 3 }
  0x22   : > { %p2650_p6 = por %p576_p3, %p121_p0  ;;  %s2474_s27 = smov [#allocation7]  }
  0x23   : > { %s3181_s26 = scalar_select %p2645_p4, 1, 0 }
  0x24   : > { %s3182_s1 = scalar_select %p2650_p6, 1, 0 }
  0x25   : > { %p2655_p8 = pnand %p1918_p5, %p635_p7  ;;  %s651_s4 = sshll.u32 %s2474_s27, 4  ;;  %s652_s4 = int_to_ptr.vmem [resolvable:$true] %s651_s4 }
  0x26   : > { %3183 = sst [smem:[#allocation22_spill]] %s3182_s1  ;;  %s2475_s28 = smov [#allocation8]  }
  0x27   : > { %s3184_s8 = scalar_select %p2655_p8, 1, 0 }
  0x28   : > { %p2113_p10 = pneg %p2655_p8  ;;  %s665_s9 = sshll.u32 %s2475_s28, 4  ;;  %s2668_s9 = int_to_ptr.vmem [resolvable:$true] %s665_s9 }
  0x29   : > { %s2476_s0 = smov [#allocation10]   ;;  %s3186_s29 = sld [smem:[#allocation31_spill]] }
  0x2a   : > { %p2664_p11 = pnand %p2113_p10, %p3145_p1  ;;  %s691_s3 = sshll.u32 %s2476_s0, 4  ;;  %s2670_s3 = int_to_ptr.vmem [resolvable:$true] %s691_s3 }
  0x2c   : > { %p2680_p13 = pneg %p2664_p11 }
  0x2f   : > { %s3187_s25 = smov %s3186_s29  ;;  %s2218_s23 = scalar_lea.hbm %s3186_s29, 16 }
  0x30   : > { %p2219_p12 = scmp.ne.s32.totalorder %s3187_s25, %s2218_s23  ;;  %p2225_p5 = scmp.lt.u32.totalorder %s2218_s23, %s3187_s25 }
  0x32   : > { %p2221_p0 = pnand %p2680_p13, %p2219_p12 }
  0x34   : > { %p2222_p3 = pneg %p2221_p0 }
  0x36   : > { %p2227_p7 = pnand %p2225_p5, %p2222_p3 }
  0x38   : > { %2230 = shalt.err (!%p2227_p7)
}
  0x39   : > { %s2231_s29 = scalar_lea.vmem %s652_s4, 16  ;;  %s2238_s22 = scalar_lea.vmem %s652_s4, 32 }
  0x3a   : > { %p2232_p10 = scmp.ne.s32.totalorder %s652_s4, %s2231_s29  ;;  %p2239_p2 = scmp.lt.s32.totalorder %s652_s4, %s652_s4 }
  0x3b   : > { %p2240_p6 = scmp.lt.s32.totalorder %s2238_s22, %s2231_s29 }
  0x3c   : > { %p2234_p9 = pnand %p2232_p10, %p2680_p13 }
  0x3d   : > { %p2241_p4 = por %p2240_p6, %p2239_p2 }
  0x3e   : > { %p2235_p1 = pneg %p2234_p9 }
  0x40   : > { %p2242_p8 = pnand %p2241_p4, %p2235_p1 }
  0x42   : > { %2245 = shalt.err (!%p2242_p8)
}
  0x43   : > { %2116 = dma.hbm_to_vmem [thread:$0]  (!%p2664_p11), %s3187_s25, 16, %s652_s4, [#allocation6]  }
  0x44   : > { %s3189_s27 = sld [smem:[#allocation33_spill]] }
  0x4a   : > { %s2246_s0 = scalar_lea.hbm %s3189_s27, 16 }
  0x4b   : > { %p2247_p9 = scmp.ne.s32.totalorder %s3189_s27, %s2246_s0  ;;  %p2253_p1 = scmp.lt.u32.totalorder %s2246_s0, %s3189_s27 }
  0x4d   : > { %p2249_p12 = pnand %p2247_p9, %p2680_p13 }
  0x4f   : > { %p2250_p2 = pneg %p2249_p12 }
  0x51   : > { %p2255_p4 = pnand %p2253_p1, %p2250_p2 }
  0x53   : > { %2258 = shalt.err (!%p2255_p4)
}
  0x54   : > { %s2259_s4 = scalar_lea.vmem %s2668_s9, 16  ;;  %s2266_s18 = scalar_lea.vmem %s2668_s9, 32 }
  0x55   : > { %p2260_p6 = scmp.ne.s32.totalorder %s2668_s9, %s2259_s4  ;;  %p2267_p3 = scmp.lt.s32.totalorder %s2668_s9, %s2668_s9 }
  0x56   : > { %p2268_p5 = scmp.lt.s32.totalorder %s2266_s18, %s2259_s4 }
  0x57   : > { %p2262_p8 = pnand %p2260_p6, %p2680_p13 }
  0x58   : > { %p2269_p7 = por %p2268_p5, %p2267_p3 }
  0x59   : > { %p2263_p0 = pneg %p2262_p8 }
  0x5b   : > { %p2270_p10 = pnand %p2269_p7, %p2263_p0 }
  0x5d   : > { %2273 = shalt.err (!%p2270_p10)
}
  0x5e   : > { %2119 = dma.hbm_to_vmem [thread:$0]  (!%p2664_p11), %s3189_s27, 16, %s2668_s9, [#allocation9]  }
  0x5f   : > { %s3190_s13 = sld [smem:[#allocation36_spill]] }
  0x65   : > { %s2274_s23 = scalar_lea.hbm %s3190_s13, 16 }
  0x66   : > { %p2275_p9 = scmp.ne.s32.totalorder %s3190_s13, %s2274_s23  ;;  %p2281_p1 = scmp.lt.u32.totalorder %s2274_s23, %s3190_s13 }
  0x68   : > { %p2277_p12 = pnand %p2275_p9, %p2680_p13 }
  0x6a   : > { %p2278_p2 = pneg %p2277_p12 }
  0x6c   : > { %p2283_p4 = pnand %p2281_p1, %p2278_p2 }
  0x6e   : > { %2286 = shalt.err (!%p2283_p4)
}
  0x6f   : > { %s2287_s9 = scalar_lea.vmem %s2670_s3, 16  ;;  %s2294_s18 = scalar_lea.vmem %s2670_s3, 32 }
  0x70   : > { %p2288_p6 = scmp.ne.s32.totalorder %s2670_s3, %s2287_s9  ;;  %p2295_p3 = scmp.lt.s32.totalorder %s2670_s3, %s2670_s3 }
  0x71   : > { %p2296_p5 = scmp.lt.s32.totalorder %s2294_s18, %s2287_s9 }
  0x72   : > { %p2290_p8 = pnand %p2288_p6, %p2680_p13 }
  0x73   : > { %p2297_p7 = por %p2296_p5, %p2295_p3 }
  0x74   : > { %p2291_p0 = pneg %p2290_p8 }
  0x76   : > { %p2298_p10 = pnand %p2297_p7, %p2291_p0 }
  0x78   : > { %2301 = shalt.err (!%p2298_p10)
}
  0x79   : > { %2122 = dma.hbm_to_vmem [thread:$0]  (!%p2664_p11), %s3190_s13, 16, %s2670_s3, [#allocation9]  }
  0x7a   : > { %s2745_s28 = sadd.s32 1, %s2472_s30   ;;  %s108_s1 = sadd.s32 1, %s2468_s6 }
  0x7b   : > { %3191 = sst [smem:[#allocation23_spill]] %s2745_s28  ;;  %s105_s5 = ssub.s32 %s2472_s30, %s2745_s28 }
  0x7c   : > { %p106_p13 = scmp.eq.s32.totalorder %s105_s5, 0  ;;  %p115_p9 = scmp.ne.s32.totalorder %s2468_s6, %s2464_s2 }
  0x7d   : > { %p116_p12 = scmp.eq.s32.totalorder %s2472_s30, 0  ;;  %p2140_p2 = scmp.lt.s32.totalorder %s2472_s30, 2 }
  0x7e   : > { %s2755_s19 = scalar_select %p106_p13, %s2468_s6, %s108_s1  }
  0x7f   : > { %p117_p1 = por %p116_p12, %p115_p9  ;;  %p3193_p4 = scmp.eq.s32.totalorder %s2636_s7, 1 }
  0x80   : > { %3192 = sst [smem:[#allocation24_spill]] %s2755_s19  ;;  %s2764_s0 = sand.u32 1, %s2468_s6  }
  0x81   : > { %p2759_p6 = por %p3193_p4, %p115_p9  ;;  %s1923_s3 = sshll.u32 %s2472_s30, 4 }
  0x82   : > { %s3196_s4 = sld [smem:[#allocation28_spill]]  ;;  %s747_s18 = scalar_lea.vmem [#allocation2], %s2764_s0 }
  0x83   : > { %s3194_s23 = scalar_select %p2759_p6, 1, 0 }
  0x84   : > { %s754_s20 = sshll.u32 %s747_s18, 4  ;;  %p2775_p11 = pnand %p2140_p2, %p117_p1  ;;  %s2773_s20 = int_to_ptr.vmem [resolvable:$true] %s754_s20 }
  0x85   : > { %3195 = sst [smem:[#allocation25_spill]] %s3194_s23  ;;  %s3198_s29 = sld [smem:[#allocation29_spill]] }
  0x86   : > { %s745_s27 = scalar_lea.sflag [#allocation3], %s2764_s0  ;;  %p2304_p0 = pneg %p2775_p11 }
  0x88   : > { %s2770_s9 = scalar_lea.hbm %s3196_s4, %s1923_s3  ;;  %s2307_s28 = scalar_lea.hbm %s3196_s4, 32 }
  0x89   : > { %s2302_s19 = scalar_lea.hbm %s2770_s9, 16  ;;  %p2308_p7 = scmp.lt.u32.totalorder %s2770_s9, %s3196_s4 }
  0x8a   : > { %p2303_p8 = scmp.ne.s32.totalorder %s2770_s9, %s2302_s19  ;;  %p2309_p10 = scmp.lt.u32.totalorder %s2307_s28, %s2302_s19 }
  0x8b   : > { %s3199_s22 = smov %s3198_s29  ;;  %s2783_s25 = scalar_lea.hbm %s3198_s29, %s1923_s3 }
  0x8c   : > { %p2305_p3 = pnand %p2304_p0, %p2303_p8  ;;  %p2310_p13 = por %p2309_p10, %p2308_p7 }
  0x8d   : > { %p2311_p9 = scmp.lt.u32.totalorder %s2302_s19, %s2770_s9 }
  0x8e   : > { %p2306_p5 = pneg %p2305_p3 }
  0x8f   : > { %p2312_p12 = por %p2311_p9, %p2310_p13 }
  0x91   : > { %p2313_p2 = pnand %p2312_p12, %p2306_p5 }
  0x93   : > { %2316 = shalt.err (!%p2313_p2)
}
  0x94   : > { %s2317_s13 = scalar_lea.vmem %s2773_s20, 16  ;;  %s2477_s6 = smov [#allocation2]  }
  0x95   : > { %p2318_p1 = scmp.ne.s32.totalorder %s2773_s20, %s2317_s13  ;;  %s2322_s3 = sshll.u32 %s2477_s6, 4  ;;  %s2323_s3 = int_to_ptr.vmem [resolvable:$false] %s2322_s3 }
  0x96   : > { %s2324_s23 = scalar_lea.vmem %s2323_s3, 32  ;;  %p2325_p3 = scmp.lt.s32.totalorder %s2773_s20, %s2323_s3 }
  0x97   : > { %p2320_p4 = pnand %p2318_p1, %p2304_p0  ;;  %p2326_p7 = scmp.lt.s32.totalorder %s2324_s23, %s2317_s13 }
  0x99   : > { %p2321_p8 = pneg %p2320_p4  ;;  %p2327_p10 = por %p2326_p7, %p2325_p3 }
  0x9b   : > { %p2328_p13 = pnand %p2327_p10, %p2321_p8 }
  0x9d   : > { %2331 = shalt.err (!%p2328_p13)
}
  0x9e   : > { %2126 = dma.hbm_to_vmem [thread:$0]  (!%p2775_p11), %s2770_s9, 16, %s2773_s20, %s745_s27  }
  0x9f   : > { %s764_s28 = scalar_lea.vmem [#allocation5], %s2764_s0  ;;  %s3200_s5 = sand.u32 1, %s2472_s30  }
  0xa0   : > { %s771_s19 = sshll.u32 %s764_s28, 4  ;;  %s762_s1 = scalar_lea.sflag [#allocation6], %s3200_s5  ;;  %s772_s19 = int_to_ptr.vmem [resolvable:$true] %s771_s19 }
  0xa1   : > { %s2332_s29 = scalar_lea.hbm %s2783_s25, 16  ;;  %s2337_s6 = scalar_lea.hbm %s3199_s22, 32 }
  0xa2   : > { %p2333_p5 = scmp.ne.s32.totalorder %s2783_s25, %s2332_s29  ;;  %p2338_p2 = scmp.lt.u32.totalorder %s2783_s25, %s3199_s22 }
  0xa3   : > { %p2339_p1 = scmp.lt.u32.totalorder %s2337_s6, %s2332_s29  ;;  %p2341_p8 = scmp.lt.u32.totalorder %s2332_s29, %s2783_s25 }
  0xa4   : > { %p2335_p9 = pnand %p2333_p5, %p2304_p0 }
  0xa5   : > { %p2340_p4 = por %p2339_p1, %p2338_p2 }
  0xa6   : > { %p2336_p12 = pneg %p2335_p9 }
  0xa7   : > { %p2342_p3 = por %p2341_p8, %p2340_p4 }
  0xa9   : > { %p2343_p7 = pnand %p2342_p3, %p2336_p12 }
  0xab   : > { %2346 = shalt.err (!%p2343_p7)
}
  0xac   : > { %s2347_s27 = scalar_lea.vmem %s772_s19, 16  ;;  %s2478_s0 = smov [#allocation5]  }
  0xad   : > { %p2348_p10 = scmp.ne.s32.totalorder %s772_s19, %s2347_s27  ;;  %s2352_s9 = sshll.u32 %s2478_s0, 4  ;;  %s2353_s9 = int_to_ptr.vmem [resolvable:$false] %s2352_s9 }
  0xae   : > { %s2354_s20 = scalar_lea.vmem %s2353_s9, 32  ;;  %p2355_p9 = scmp.lt.s32.totalorder %s772_s19, %s2353_s9 }
  0xaf   : > { %p2350_p13 = pnand %p2348_p10, %p2304_p0  ;;  %p2356_p6 = scmp.lt.s32.totalorder %s2354_s20, %s2347_s27 }
  0xb1   : > { %p2351_p5 = pneg %p2350_p13  ;;  %p2357_p1 = por %p2356_p6, %p2355_p9 }
  0xb3   : > { %p2358_p2 = pnand %p2357_p1, %p2351_p5 }
  0xb5   : > { %2361 = shalt.err (!%p2358_p2)
}
  0xb6   : > { %2129 = dma.hbm_to_vmem [thread:$0]  (!%p2775_p11), %s2783_s25, 16, %s772_s19, %s762_s1  }
  0xb7   : > { %p3201_p12 = scmp.ne.s32.totalorder %s3184_s8, 0 }
  0xb8   : > { %s2836_s28 = sand.u32 (!%p3201_p12), 1, %s2464_s2   ;;  %p3202_p0 = scmp.ne.s32.totalorder (!%p3201_p12), %s3181_s26, 0 }
  0xb9   : > { %780 = sbr.rel (%p3201_p12) target bundleno = 3141 (0xc45), region = 112  ;;  %s783_s5 = scalar_lea.sflag (!%p3201_p12), [#allocation3], %s2836_s28 }
  0xc0   : > { %2435 = dma.done.wait (%p3202_p0), %s783_s5, 16  }
  0xc1   : > { %2437 = vsyncadd (%p3202_p0), %s783_s5, 4294967280  ;;  %s790_s25 = sand.u32 1, %s2636_s7  }
  0xc2   : > { %s791_s24 = scalar_lea.sflag [#allocation6], %s790_s25 }
  0xc3   : > { %2439 = dma.done.wait (%p3202_p0), %s791_s24, 16  }
  0xc4   : > { %2441 = vsyncadd (%p3202_p0), %s791_s24, 4294967280  ;;  %p3203_p6 = scmp.eq.s32.totalorder %s2636_s7, 0 }
  0xc6   : > { %2443 = dma.done.wait (%p3203_p6), [#allocation6], 16   ;;  %p3204_p11 = pmov %p3203_p6 }
  0xc7   : > { %p3205_p4 = pmov %p3203_p6 }
  0xc8   : > { %2445 = vsyncadd (%p3204_p11), [#allocation6], 4294967280 }
  0xc9   : > { %2447 = dma.done.wait (%p3205_p4), [#allocation9], 32   ;;  %p3206_p8 = pmov %p3205_p4 }
  0xca   : > { %p893_p3 = scmp.lt.s32.totalorder %s2636_s7, 1  ;;  %v2479_v0 = vmov 0.0   ;;  %vm2480_vm0 = vmmov 0   ;;  %s3207_s13 = sld [smem:[#allocation32_spill]]  ;;  %vm934_vm1 = vcmask 261120   ;;  %v1173_v27 = vlaneseq  ;;  %v2192_v55 = vld [vmem:[%s3118_s10] sm:$0xff]  }
  0xcb   : > { %2449 = vsyncadd (%p3206_p8), [#allocation9], 4294967264  ;;  %2021 = vmatprep.subr.bf16.mxu1 %v2479_v0  ;;  %2013 = vmatprep.subr.bf16.mxu0 %v2479_v0  ;;  %s3208_s0 = sld [smem:[#allocation30_spill]]  ;;  %s3209_s5 = sld [smem:[#allocation27_spill]]  ;;  %v1939_v8 = vld [vmem:[#allocation8] ss:$0 sm:$0xff] }
  0xcc   : > { %2025 = vmatprep.mubr.msk.bf16.mxu1 %vm2480_vm0, %v2479_v0  ;;  %s894_s26 = scalar_select %p893_p3, %s2636_s7, 1  ;;  %2017 = vmatprep.mubr.msk.bf16.mxu0 %vm2480_vm0, %v2479_v0  ;;  %v1935_v10 = vld [vmem:[#allocation7] ss:$0 sm:$0xff]  ;;  %v1174_v29 = vshrl.u32 %v1173_v27, 7  ;;  %v2481_v31 = vmov 0   ;;  %vm1179_vm4 = vcmask 130048  }
  0xcd   : > { %s3210_s8 = sld [smem:[#allocation26_spill]]  ;;  %s3213_s9 = scalar_lea.vmem [#allocation2], %s2836_s28  ;;  %v2193_v60 = vld [vmem:[%s3118_s10 + $0x8] sm:$0xff]   ;;  %vm1442_vm5 = vcmask 523264   ;;  %vm1670_vm6 = vcmask 257024   ;;  %vm1658_vm7 = vcmask 15360  }
  0xce   : > { %s2866_s19 = sshll.u32 %s894_s26, 3  ;;  %s3211_s6 = sld [smem:[#allocation34_spill]]  ;;  %v1170_v28 = vld [vmem:[%s3213_s9] sm:$0x1]  ;;  %v1175_v30 = vsub.s32 0, %v1174_v29  ;;  %vm1672_vm8 = vcmask 7168  }
  0xcf   : > { %vm1171_vm2 = vcmp.gt.f32.partialorder %v1170_v28, 0.5  ;;  %s3214_s20 = scalar_lea.vmem [#allocation5], %s2836_s28  ;;  %s3215_s24 = sld [smem:[#allocation35_spill]] }
  0xd0   : > { %v2185_v1 = vld [vmem:[%s3207_s13] sm:$0xff]   ;;  %v2186_v2 = vld [vmem:[%s3207_s13 + $0x8] sm:$0xff]   ;;  %v1172_v32 = vsel %vm1171_vm2, 1, %v2481_v31  ;;  %s3157_s26 = sshll.u32 %s2836_s28, 2  ;;  %s3220_s23 = sld [smem:[#allocation25_spill]] }
  0xd1   : > { %2022 = vmatpush3.bf16.msra.mxu1 %v2185_v1  ;;  %v2187_v3 = vld [vmem:[%s3208_s0] sm:$0xff]   ;;  %s901_s25 = scalar_lea.vmem %s3209_s5, %s2866_s19  ;;  %v2189_v4 = vld [vmem:[%s3208_s0 + $0x8] sm:$0xff]   ;;  %v1176_v33 = vrot.slane %v1172_v32, %v1175_v30  ;;  %s3222_s29 = sld [smem:[#allocation41_spill]] }
  0xd2   : > { %2023 = vmatprep.subr.bf16.mxu1 %v2479_v0  ;;  %2014 = vmatpush3.bf16.msra.mxu0 %v2187_v3  ;;  %v2188_v5 = vld [vmem:[%s901_s25] sm:$0xff]   ;;  %s1978_s25 = sshll.u32 %s2636_s7, 6 }
  0xd3   : > { %s896_s1 = scalar_lea.vmem %s3210_s8, %s2866_s19  ;;  %2015 = vmatprep.subr.bf16.mxu0 %v2479_v0  ;;  %v1948_v34 = vld [vmem:[%s3214_s20] ss:$0 sm:$0xff]  ;;  %vm1177_vm3 = vcmp.eq.s32.totalorder %v1176_v33, 1  ;;  %s3216_s8 = sld [smem:[#allocation39_spill]] }
  0xd4   : > { %v2890_v6 = vld [vmem:[%s896_s1] sm:$0xff]  ;;  %s3212_s3 = smov %s3211_s6  ;;  %s3217_s20 = sld [smem:[#allocation37_spill]] }
  0xd5   : > { %2024 = vmatpush3.bf16.msra.mxu1 %v2186_v2  ;;  %v910_v7 = vpack.c.bf16 %v2890_v6, %v2890_v6  ;;  %v2190_v25 = vld [vmem:[%s3211_s6] sm:$0xff]   ;;  %v2191_v26 = vld [vmem:[%s3212_s3 + $0x8] sm:$0xff]   ;;  %s3019_s1 = scalar_lea.vmem [#allocation11], %s3157_s26  ;;  %s3219_s6 = sld [smem:[#allocation40_spill]] }
  0xd6   : > { %2037 = vmatprep.subr.bf16.mxu1 %v2479_v0  ;;  %2016 = vmatpush3.bf16.msra.mxu0 %v2189_v4  ;;  %v1944_v49 = vld [vmem:[%s3215_s24] ss:$0 sm:$0xff]  ;;  %s3218_s24 = sld [smem:[#allocation38_spill]]  ;;  %s1706_s0 = sshll.u32 %s3019_s1, 4  ;;  %s1707_s0 = int_to_ptr.vmem [resolvable:$true] %s1706_s0 }
  0xd7   : > { %2029 = vmatprep.subr.bf16.mxu0 %v2479_v0  ;;  %v1951_v3 = vld [vmem:[%s3119_s11] ss:$0 sm:$0xff]  ;;  %s3223_s26 = smov %s3222_s29  ;;  %s1684_s3 = scalar_lea.sflag [#allocation4], %s2836_s28 }
  0xd8   : > { %2026 = vmatmul.mubr.msk.bf16.vlgmr.msra.gmra.mrb[0].mxu1 %vm934_vm1, %v2188_v5  ;;  %s2362_s4 = scalar_lea.vmem %s1707_s0, 64  ;;  %p3224_p10 = scmp.ne.s32.totalorder %s3220_s23, 0 }
  0xd9   : > { %2039 = vmatprep.mubr.msk.bf16.mxu1 %vm2480_vm0, %v2479_v0  ;;  %2018 = vmatmul.mubr.msk.bf16.vlgmr.msra.gmra.mrb[0].mxu0 %vm934_vm1, %v910_v7  ;;  %p2363_p7 = scmp.ne.s32.totalorder %s1707_s0, %s2362_s4 }
  0xda   : > { %2033 = vmatprep.mubr.msk.bf16.mxu0 %vm2480_vm0, %v2479_v0  ;;  %2030 = vmatpush3.bf16.msra.mxu0 %v2190_v25  ;;  %v2199_v25 = vld [vmem:[%s3124_s16 + $0x8] sm:$0xff]  }
  0xdb   : > { %2031 = vmatprep.subr.bf16.mxu0 %v2479_v0  ;;  %p2364_p13 = pnand %p2363_p7, %p3224_p10 }
  0xdd   : > { %p2365_p5 = pneg %p2364_p13 }
  0xde   : > { %2032 = vmatpush3.bf16.msra.mxu0 %v2191_v26 }
  0xdf   : > { %2043 = vmatprep.subr.bf16.mxu0 %v2479_v0 }
  0xe1   : > { %2034 = vmatmul.mubr.msk.bf16.vlgmr.msra.gmra.mrb[4].mxu0 %vm934_vm1, %v2188_v5 }
  0xe2   : > { %2045 = vmatprep.mubr.msk.bf16.mxu0 %vm2480_vm0, %v2479_v0 }
 0x1ab   : > { %v1044_v9 = vpop.f32.mrb[0].mxu1 }
 0x1ac   : > { %v2027_v11 = vpop.f32.mrb[1].mxu1  ;;  %v972_v13 = vpop.f32.mrb[0].mxu0  ;;  %v1045_v14 = vadd.f32 %v1939_v8, %v1044_v9 }
 0x1ad   : > { %v1047_v12 = vpop.f32.mrb[2].mxu1  ;;  %v973_v17 = vadd.f32 %v1935_v10, %v972_v13  ;;  %v2019_v18 = vpop.f32.mrb[1].mxu0 }
 0x1ae   : > { %v1048_v15 = vadd.f32 %v1939_v8, %v1047_v12  ;;  %v2028_v16 = vpop.f32.mrb[3].mxu1  ;;  %v975_v19 = vpop.f32.mrb[2].mxu0 }
 0x1af   : > { %v2020_v21 = vpop.f32.mrb[3].mxu0  ;;  %v978_v22 = vmul.f32 0.17677669, %v973_v17 }
 0x1b0   : > { %v1116_v20 = vpack.c.bf16 %v1048_v15, %v1045_v14 }
 0x1b1   : > { %v1115_v24 = vpack.c.bf16 %v978_v22, %v978_v22 }
 0x1b2   : > { %v1128_v23 = vsel %vm934_vm1, %v1116_v20, 0 }
 0x1b3   : > { %2038 = vmatpush3.bf16.xpose.msra.mxu1 %v1128_v23  ;;  %v2195_v23 = vld [vmem:[%s3122_s14 + $0x8] sm:$0xff]  }
 0x1b4   : > { %2049 = vmatprep.subr.bf16.mxu1 %v2479_v0  ;;  %v1108_v42 = vpop.f32.mrb[4].mxu0 }
 0x1b5   : > { %v2035_v43 = vpop.f32.mrb[5].mxu0  ;;  %v1109_v50 = vadd.f32 %v1944_v49, %v1108_v42 }
 0x1b6   : > { %v1111_v51 = vpop.f32.mrb[6].mxu0  ;;  %v2197_v43 = vld [vmem:[%s3129_s21 + $0x8] sm:$0xff]  }
 0x1b7   : > { %v2036_v52 = vpop.f32.mrb[7].mxu0  ;;  %v1112_v53 = vadd.f32 %v1944_v49, %v1111_v51 }
 0x1b9   : > { %v1192_v54 = vpack.c.bf16 %v1112_v53, %v1109_v50 }
 0x1ba   : > { %2040 = vmatmul.mubr.msk.bf16.vlgmr.msra.gmra.mrb[4].mxu1 %vm934_vm1, %v1115_v24  ;;  %v2198_v24 = vld [vmem:[%s3124_s16] sm:$0xff]  }
 0x1bb   : > { %2053 = vmatprep.mubr.msk.bf16.mxu1 %vm2480_vm0, %v2479_v0  ;;  %2044 = vmatpush3.bf16.msra.mxu0 %v1192_v54 }
 0x1bc   : > { %2057 = vmatprep.subr.bf16.mxu0 %v2479_v0  ;;  %2050 = vmatpush3.bf16.msra.mxu1 %v2192_v55 }
 0x1bd   : > { %2051 = vmatprep.subr.bf16.mxu1 %v2479_v0 }
 0x1c0   : > { %2052 = vmatpush3.bf16.msra.mxu1 %v2193_v60 }
 0x1c1   : > { %2065 = vmatprep.subr.bf16.mxu1 %v2479_v0 }
 0x28d   : > { %v1164_v35 = vpop.f32.mrb[4].mxu1 }
 0x28e   : > { %v1165_v36 = vadd.f32 %v1948_v34, %v1164_v35  ;;  %v2041_v37 = vpop.f32.mrb[5].mxu1  ;;  %v1955_v35 = vld [vmem:[%s3120_s12] ss:$0 sm:$0xff] }
 0x28f   : > { %v1167_v38 = vpop.f32.mrb[6].mxu1 }
 0x290   : > { %v2042_v39 = vpop.f32.mrb[7].mxu1  ;;  %v1178_v40 = vsel %vm1177_vm3, -1e+30, %v1165_v36  ;;  %v1956_v38 = vld [vmem:[#allocation10] ss:$0 sm:$0xff] }
 0x291   : > { %v1180_v41 = vsel %vm1179_vm4, %v1178_v40, -inf }
 0x292   : > { %1181 = vmax.xlane.f32.xlu0 %v1180_v41 }
 0x31f   : > { %v1182_v44 = vpop.xlane.xlu0 %1181 }
 0x320   : > { %v1183_v45 = vsub.f32 %v1178_v40, %v1182_v44  ;;  %v2196_v40 = vld [vmem:[%s3129_s21] sm:$0xff]  }
 0x322   : > { %v1184_v46 = vmul.f32 1.442695, %v1183_v45 }
 0x324   : > { %2204 = vpow2.f32 %v1184_v46  ;;  %v2200_v46 = vld [vmem:[%s3124_s16 + $0x10] sm:$0xff]  }
 0x32e   : > { %v2205_v47 = vpop.eup %2204 }
 0x32f   : > { %v1186_v48 = vsel %vm1179_vm4, %v2205_v47, 0.0 }
 0x330   : > { %1187 = vadd.xlane.f32.xlu0 %v1186_v48  ;;  %v1957_v48 = vld [vmem:[%s3123_s15] ss:$0 sm:$0xff] }
 0x3bd   : > { %v1188_v56 = vpop.xlane.xlu0 %1187 }
 0x3be   : > { %2206 = vrcp.f32 %v1188_v56 }
 0x3c8   : > { %v2207_v57 = vpop.eup %2206 }
 0x3c9   : > { %v2932_v58 = vmul.f32 %v2207_v57, %v2205_v47  ;;  %v2201_v47 = vld [vmem:[%s3124_s16 + $0x18] sm:$0xff]  }
 0x3cb   : > { %v1191_v59 = vpack.c.bf16 %v2932_v58, %v2932_v58 }
 0x3cd   : > { %2046 = vmatmul.mubr.msk.bf16.vlgmr.msra.gmra.mrb[8].mxu0 %vm1179_vm4, %v1191_v59 }
 0x3ce   : > { %2061 = vmatprep.mubr.msk.bf16.mxu0 %vm2480_vm0, %v2479_v0 }
 0x4a0   : > { %v1230_v61 = vpop.f32.mrb[8].mxu0 }
 0x4a1   : > { %v1236_v62 = vpack.c.bf16 %v1230_v61, %v1230_v61  ;;  %v2047_v63 = vpop.f32.mrb[9].mxu0  ;;  %v1961_v61 = vld [vmem:[%s3125_s17] ss:$0 sm:$0xff] }
 0x4a2   : > { %v1233_v1 = vpop.f32.mrb[10].mxu0 }
 0x4a3   : > { %v2048_v2 = vpop.f32.mrb[11].mxu0  ;;  %2054 = vmatmul.mubr.msk.bf16.vlgmr.msra.gmra.mrb[8].mxu1 %vm934_vm1, %v1236_v62 }
 0x4a4   : > { %2073 = vmatprep.mubr.msk.bf16.mxu1 %vm2480_vm0, %v2479_v0  ;;  %2066 = vmatpush3.bf16.msra.mxu1 %v2198_v24 }
 0x4a5   : > { %2067 = vmatprep.subr.bf16.mxu1 %v2479_v0 }
 0x4a8   : > { %2068 = vmatpush3.bf16.msra.mxu1 %v2199_v25 }
 0x4a9   : > { %2069 = vmatprep.subr.bf16.mxu1 %v2479_v0 }
 0x4ac   : > { %2070 = vmatpush3.bf16.msra.mxu1 %v2200_v46 }
 0x4ad   : > { %2071 = vmatprep.subr.bf16.mxu1 %v2479_v0 }
 0x4b0   : > { %2072 = vmatpush3.bf16.msra.mxu1 %v2201_v47 }
 0x576   : > { %v1297_v4 = vpop.f32.mrb[8].mxu1 }
 0x577   : > { %v1298_v5 = vadd.f32 %v1951_v3, %v1297_v4  ;;  %v2055_v7 = vpop.f32.mrb[9].mxu1 }
 0x578   : > { %v1300_v8 = vpop.f32.mrb[10].mxu1 }
 0x579   : > { %v2056_v9 = vpop.f32.mrb[11].mxu1  ;;  %v1515_v10 = vsel %vm934_vm1, %v1298_v5, 0.0  ;;  %v1303_v11 = vadd.f32 %v1298_v5, %v2890_v6  ;;  %v2194_v6 = vld [vmem:[%s3122_s14] sm:$0xff]  }
 0x57a   : > { %1516 = vadd.xlane.f32.xlu0 %v1515_v10  ;;  %2058 = vmatpush3.bf16.msra.mxu0 %v2194_v6  ;;  %v1975_v6 = vld [vmem:[%s3219_s6] ss:$0 sm:$0xff]  ;;  %s3035_s6 = scalar_lea.hbm %s3222_s29, %s1978_s25 }
 0x57b   : > { %v1306_v12 = vsel %vm934_vm1, %v1303_v11, 0.0  ;;  %2059 = vmatprep.subr.bf16.mxu0 %v2479_v0 }
 0x57c   : > { %1307 = vadd.xlane.f32.xlu1 %v1306_v12  ;;  %v2203_v12 = vld [vmem:[%s3216_s8 + $0x8] sm:$0xff]  }
 0x57e   : > { %2060 = vmatpush3.bf16.msra.mxu0 %v2195_v23 }
 0x57f   : > { %2077 = vmatprep.subr.bf16.mxu0 %v2479_v0 }
 0x607   : > { %v1517_v13 = vpop.xlane.xlu0 %1516 }
 0x608   : > { %v1518_v14 = vmul.f32 0.03125, %v1517_v13 }
 0x609   : > { %v1308_v15 = vpop.xlane.xlu1 %1307 }
 0x60a   : > { %v1519_v16 = vsub.f32 %v1298_v5, %v1518_v14  ;;  %v1310_v17 = vmul.f32 0.03125, %v1308_v15 }
 0x60c   : > { %v1311_v18 = vsub.f32 %v1303_v11, %v1310_v17  ;;  %v1520_v19 = vmul.f32 %v1519_v16, %v1519_v16  ;;  %v2202_v11 = vld [vmem:[%s3216_s8] sm:$0xff]  }
 0x60d   : > { %v1967_v17 = vld [vmem:[%s3217_s20] ss:$0 sm:$0xff]  ;;  %s3221_s20 = sld [smem:[#allocation42_spill]] }
 0x60e   : > { %v1521_v20 = vsel %vm934_vm1, %v1520_v19, 0.0  ;;  %v1312_v21 = vmul.f32 %v1311_v18, %v1311_v18  ;;  %v1968_v19 = vld [vmem:[%s3218_s24] ss:$0 sm:$0xff] }
 0x60f   : > { %1522 = vadd.xlane.f32.xlu0 %v1521_v20 }
 0x610   : > { %v1313_v22 = vsel %vm934_vm1, %v1312_v21, 0.0 }
 0x611   : > { %1314 = vadd.xlane.f32.xlu1 %v1313_v22 }
 0x613   : > { %s905_s5 = scalar_lea.vmem %s3221_s20, %s2866_s19  ;;  %s2483_s19 = smov [#allocation11]  }
 0x614   : > { %s2366_s27 = sshll.u32 %s2483_s19, 4  ;;  %s2367_s27 = int_to_ptr.vmem [resolvable:$false] %s2366_s27 }
 0x615   : > { %s2368_s9 = scalar_lea.vmem %s2367_s27, 128  ;;  %p2369_p9 = scmp.lt.s32.totalorder %s1707_s0, %s2367_s27 }
 0x616   : > { %p2370_p1 = scmp.lt.s32.totalorder %s2368_s9, %s2362_s4 }
 0x618   : > { %p2371_p2 = por %p2370_p1, %p2369_p9 }
 0x61a   : > { %p2372_p12 = pnand %p2371_p2, %p2365_p5 }
 0x69c   : > { %v1523_v26 = vpop.xlane.xlu0 %1522 }
 0x69d   : > { %v1524_v27 = vmul.f32 0.03125, %v1523_v26 }
 0x69e   : > { %v1315_v28 = vpop.xlane.xlu1 %1314 }
 0x69f   : > { %v1525_v29 = vadd.f32 1e-05, %v1524_v27  ;;  %v1316_v30 = vmul.f32 0.03125, %v1315_v28 }
 0x6a1   : > { %v1317_v31 = vadd.f32 1e-05, %v1316_v30  ;;  %2208 = vrsqrt.f32 %v1525_v29 }
 0x6a3   : > { %2210 = vrsqrt.f32 %v1317_v31 }
 0x6ab   : > { %v2209_v32 = vpop.eup %2208 }
 0x6ac   : > { %v1527_v36 = vmul.f32 %v2209_v32, %v1519_v16 }
 0x6ad   : > { %v2211_v33 = vpop.eup %2210 }
 0x6ae   : > { %v1319_v34 = vmul.f32 %v2211_v33, %v1311_v18  ;;  %v1528_v42 = vmul.f32 %v1955_v35, %v1527_v36 }
 0x6b0   : > { %v1326_v37 = vmul.f32 %v1955_v35, %v1319_v34  ;;  %v1529_v44 = vadd.f32 %v1956_v38, %v1528_v42  ;;  %v2482_v34 = vmov 1  }
 0x6b1   : > { %2184 = vset.pattern.permute.xlu0 %v2482_v34 }
 0x6b2   : > { %v1333_v39 = vadd.f32 %v1956_v38, %v1326_v37  ;;  %v1535_v45 = vpack.c.bf16 %v1529_v44, %v1529_v44 }
 0x6b4   : > { %v1334_v41 = vpack.c.bf16 %v1333_v39, %v1333_v39 }
 0x6b6   : > { %2062 = vmatmul.mubr.msk.bf16.vlgmr.msra.gmra.mrb[12].mxu0 %vm934_vm1, %v1334_v41 }
 0x6b7   : > { %2078 = vmatpush3.bf16.msra.mxu0 %v2196_v40  ;;  %2081 = vmatprep.mubr.msk.bf16.mxu0 %vm2480_vm0, %v2479_v0 }
 0x6b8   : > { %2079 = vmatprep.subr.bf16.mxu0 %v2479_v0 }
 0x6bb   : > { %2080 = vmatpush3.bf16.msra.mxu0 %v2197_v43 }
 0x6bc   : > { %2085 = vmatprep.subr.bf16.mxu0 %v2479_v0 }
 0x6be   : > { %2082 = vmatmul.mubr.msk.bf16.vlgmr.msra.gmra.mrb[16].mxu0 %vm934_vm1, %v1535_v45 }
 0x6bf   : > { %2089 = vmatprep.mubr.msk.bf16.mxu0 %vm2480_vm0, %v2479_v0  ;;  %2086 = vmatpush3.bf16.msra.mxu0 %v2202_v11 }
 0x6c0   : > { %2087 = vmatprep.subr.bf16.mxu0 %v2479_v0 }
 0x6c3   : > { %2088 = vmatpush3.bf16.msra.mxu0 %v2203_v12 }
 0x789   : > { %v1395_v49 = vpop.f32.mrb[12].mxu0 }
 0x78a   : > { %v1396_v50 = vadd.f32 %v1957_v48, %v1395_v49  ;;  %v2063_v51 = vpop.f32.mrb[13].mxu0 }
 0x78b   : > { %v1398_v52 = vpop.f32.mrb[14].mxu0 }
 0x78c   : > { %v1401_v53 = vmax.f32 %v1396_v50, 0.0  ;;  %v2064_v54 = vpop.f32.mrb[15].mxu0 }
 0x78e   : > { %v1402_v55 = vpack.c.bf16 %v1401_v53, %v1401_v53 }
 0x790   : > { %2074 = vmatmul.mubr.msk.bf16.vlgmr.msra.gmra.mrb[12].mxu1 %vm1442_vm5, %v1402_v55 }
 0x791   : > { %v1589_v56 = vpop.f32.mrb[16].mxu0 }
 0x792   : > { %v2083_v57 = vpop.f32.mrb[17].mxu0 }
 0x793   : > { %v1592_v59 = vpop.f32.mrb[18].mxu0 }
 0x794   : > { %v2084_v60 = vpop.f32.mrb[19].mxu0 }
 0x863   : > { %v1480_v62 = vpop.f32.mrb[12].mxu1 }
 0x864   : > { %v1481_v63 = vadd.f32 %v1961_v61, %v1480_v62  ;;  %v2075_v1 = vpop.f32.mrb[13].mxu1 }
 0x865   : > { %v1483_v2 = vpop.f32.mrb[14].mxu1 }
 0x866   : > { %v2076_v3 = vpop.f32.mrb[15].mxu1  ;;  %v1488_v4 = vsel %vm934_vm1, %v1481_v63, 0.0 }
 0x867   : > { %1489 = vadd.xlane.f32.xlu1 %v1488_v4 }
 0x8f4   : > { %v1490_v5 = vpop.xlane.xlu1 %1489 }
 0x8f5   : > { %v1491_v7 = vmul.f32 0.03125, %v1490_v5 }
 0x8f7   : > { %v1492_v8 = vsub.f32 %v1481_v63, %v1491_v7 }
 0x8f9   : > { %v1493_v9 = vmul.f32 %v1492_v8, %v1492_v8 }
 0x8fb   : > { %v1494_v10 = vsel %vm934_vm1, %v1493_v9, 0.0 }
 0x8fc   : > { %1495 = vadd.xlane.f32.xlu1 %v1494_v10 }
 0x989   : > { %v1496_v13 = vpop.xlane.xlu1 %1495 }
 0x98a   : > { %v1497_v14 = vmul.f32 0.03125, %v1496_v13 }
 0x98c   : > { %v1498_v15 = vadd.f32 1e-05, %v1497_v14 }
 0x98e   : > { %2212 = vrsqrt.f32 %v1498_v15 }
 0x998   : > { %v2213_v16 = vpop.eup %2212 }
 0x999   : > { %v1500_v18 = vmul.f32 %v2213_v16, %v1492_v8 }
 0x99b   : > { %v1507_v20 = vmul.f32 %v1967_v17, %v1500_v18 }
 0x99d   : > { %v1514_v21 = vadd.f32 %v1968_v19, %v1507_v20 }
 0x99f   : > { %v1530_v0 = vpack.c.bf16 %v1514_v21, %v1514_v21 }
 0x9a1   : > { %2090 = vmatmul.mubr.msk.bf16.vlgmr.msra.gmra.mrb[20].mxu0 %vm934_vm1, %v1530_v0  ;;  %1671 = vst.msk [vmem:[%s3019_s1] sm:$0xf] %vm1670_vm6, %v1530_v0 }
 0xa74   : > { %v1644_v22 = vpop.f32.mrb[20].mxu0 }
 0xa75   : > { %v1645_v23 = vadd.f32 %v1644_v22, %v1589_v56  ;;  %v2091_v24 = vpop.f32.mrb[21].mxu0 }
 0xa76   : > { %v1647_v25 = vpop.f32.mrb[22].mxu0 }
 0xa77   : > { %v2092_v26 = vpop.f32.mrb[23].mxu0  ;;  %v1657_v27 = vadd.f32 %v1975_v6, %v1645_v23 }
 0xa79   : > { %v1659_v28 = vsel %vm1658_vm7, %v1657_v27, -inf }
 0xa7a   : > { %1660 = vmax.xlane.f32.xlu0 %v1659_v28 }
 0xb07   : > { %v1661_v29 = vpop.xlane.xlu0 %1660 }
 0xb08   : > { %v1662_v30 = vsub.f32 %v1657_v27, %v1661_v29 }
 0xb0a   : > { %v1663_v31 = vmul.f32 1.442695, %v1662_v30 }
 0xb0c   : > { %2214 = vpow2.f32 %v1663_v31 }
 0xb16   : > { %v2215_v32 = vpop.eup %2214 }
 0xb17   : > { %v1665_v33 = vsel %vm1658_vm7, %v2215_v32, 0.0 }
 0xb18   : > { %1666 = vadd.xlane.f32.xlu1 %v1665_v33 }
 0xba5   : > { %v1667_v35 = vpop.xlane.xlu1 %1666 }
 0xba6   : > { %2216 = vrcp.f32 %v1667_v35 }
 0xbb0   : > { %v2217_v36 = vpop.eup %2216 }
 0xbb1   : > { %v1669_v37 = vmul.f32 %v2217_v36, %v2215_v32 }
 0xbb3   : > { %1676 = vperm.xlu0 %2184, %v1669_v37   ;;  %1673 = vst.msk [vmem:[%s905_s5] sm:$0xff] %vm1672_vm8, %v1669_v37 }
 0xbb4   : > { %2375 = shalt.err (!%p2372_p12)
}
 0xbb5   : > { %s2376_s1 = scalar_lea.hbm %s3035_s6, 64  ;;  %s2380_s24 = scalar_lea.hbm %s3223_s26, 128 }
 0xbb6   : > { %p2377_p0 = scmp.ne.s32.totalorder %s3035_s6, %s2376_s1  ;;  %p2381_p4 = scmp.lt.u32.totalorder %s3035_s6, %s3223_s26 }
 0xbb7   : > { %p2382_p8 = scmp.lt.u32.totalorder %s2380_s24, %s2376_s1  ;;  %p2384_p7 = scmp.lt.u32.totalorder %s2376_s1, %s3035_s6 }
 0xbb8   : > { %p2378_p6 = pnand %p2377_p0, %p3224_p10 }
 0xbb9   : > { %p2383_p3 = por %p2382_p8, %p2381_p4 }
 0xbba   : > { %p2379_p11 = pneg %p2378_p6 }
 0xbbb   : > { %p2385_p13 = por %p2384_p7, %p2383_p3 }
 0xbbd   : > { %p2386_p5 = pnand %p2385_p13, %p2379_p11 }
 0xbbf   : > { %2389 = shalt.err (!%p2386_p5)
}
 0xbc0   : > { %2109 = dma.vmem_to_hbm [thread:$0]  (%p3224_p10), %s1707_s0, 64, %s3035_s6, %s1684_s3   ;;  %vm1681_vm9 = vcmask 125952  }
 0xbc1   : > { %s3225_s4 = sshll.u32 %s2836_s28, 2  ;;  %s3226_s20 = sld [smem:[#allocation43_spill]] }
 0xbc2   : > { %s892_s19 = scalar_lea.vmem [#allocation12], %s3225_s4  ;;  %s1693_s0 = scalar_lea.sflag [#allocation13], %s2836_s28 }
 0xbc3   : > { %s1722_s27 = sshll.u32 %s892_s19, 4  ;;  %s2484_s6 = smov [#allocation12]   ;;  %s3066_s27 = int_to_ptr.vmem [resolvable:$true] %s1722_s27 }
 0xbc4   : > { %s2390_s3 = scalar_lea.vmem %s3066_s27, 64  ;;  %s2394_s24 = sshll.u32 %s2484_s6, 4  ;;  %s2395_s24 = int_to_ptr.vmem [resolvable:$false] %s2394_s24 }
 0xbc5   : > { %p2391_p9 = scmp.ne.s32.totalorder %s3066_s27, %s2390_s3  ;;  %s2396_s7 = scalar_lea.vmem %s2395_s24, 128 }
 0xbc6   : > { %p2397_p12 = scmp.lt.s32.totalorder %s3066_s27, %s2395_s24  ;;  %p2398_p0 = scmp.lt.s32.totalorder %s2396_s7, %s2390_s3 }
 0xbc7   : > { %s3064_s5 = scalar_lea.hbm %s3226_s20, %s1978_s25  ;;  %p2392_p1 = pnand %p2391_p9, %p3224_p10 }
 0xbc8   : > { %p2399_p6 = por %p2398_p0, %p2397_p12 }
 0xbc9   : > { %p2393_p2 = pneg %p2392_p1 }
 0xbcb   : > { %p2400_p11 = pnand %p2399_p6, %p2393_p2 }
 0xc32   : > { %v1677_v38 = vpop.permute.xlu0 %1676 }
 0xc33   : > { %v1679_v39 = vmul.f32 %v1677_v38, %v2932_v58 }
 0xc35   : > { %v1680_v40 = vpack.c.bf16 %v1679_v39, %v1679_v39 }
 0xc37   : > { %1682 = vst.msk [vmem:[%s892_s19] sm:$0xf] %vm1681_vm9, %v1680_v40 }
 0xc38   : > { %2403 = shalt.err (!%p2400_p11)
}
 0xc39   : > { %s2404_s28 = scalar_lea.hbm %s3064_s5, 64  ;;  %s2408_s29 = scalar_lea.hbm %s3226_s20, 128 }
 0xc3a   : > { %p2405_p4 = scmp.ne.s32.totalorder %s3064_s5, %s2404_s28  ;;  %p2409_p7 = scmp.lt.u32.totalorder %s3064_s5, %s3226_s20 }
 0xc3b   : > { %p2410_p13 = scmp.lt.u32.totalorder %s2408_s29, %s2404_s28  ;;  %p2412_p9 = scmp.lt.u32.totalorder %s2404_s28, %s3064_s5 }
 0xc3c   : > { %p2406_p8 = pnand %p2405_p4, %p3224_p10 }
 0xc3d   : > { %p2411_p5 = por %p2410_p13, %p2409_p7 }
 0xc3e   : > { %p2407_p3 = pneg %p2406_p8 }
 0xc3f   : > { %p2413_p1 = por %p2412_p9, %p2411_p5 }
 0xc41   : > { %p2414_p2 = pnand %p2413_p1, %p2407_p3 }
 0xc43   : > { %2417 = shalt.err (!%p2414_p2)
}
 0xc44   : > { %2110 = dma.vmem_to_hbm [thread:$0]  (%p3224_p10), %s3066_s27, 64, %s3064_s5, %s1693_s0  }
 0xc45 PF: > { %s3227_s9 = sld [smem:[#allocation20_spill]]  ;;  %s3228_s1 = sld [smem:[#allocation22_spill]] }
 0xc46   : > { %p3230_p0 = scmp.ge.s32.totalorder %s2472_s30, 2 }
 0xc4b   : > { %s1734_s3 = sand.u32 1, %s3227_s9   ;;  %p3229_p12 = scmp.ne.s32.totalorder %s3228_s1, 0 }
 0xc4c   : > { %s1735_s6 = scalar_lea.sflag [#allocation4], %s1734_s3 }
 0xc4d   : > { %p2131_p6 = pnand %p3230_p0, %p3229_p12 }
 0xc4f   : > { %2451 = dma.done.wait (!%p2131_p6), %s1735_s6, 64  }
 0xc50   : > { %2453 = vsyncadd (!%p2131_p6), %s1735_s6, 4294967232  ;;  %s1751_s24 = scalar_lea.sflag [#allocation13], %s1734_s3 }
 0xc51   : > { %2455 = dma.done.wait (!%p2131_p6), %s1751_s24, 64  }
 0xc52   : > { %2457 = vsyncadd (!%p2131_p6), %s1751_s24, 4294967232  ;;  %s3231_s30 = sld [smem:[#allocation23_spill]]  ;;  %s3232_s23 = sld [smem:[#allocation21_spill]] }
 0xc53   : > { %s3233_s6 = sld [smem:[#allocation24_spill]]  ;;  %s3234_s29 = smov %s2464_s2 }
 0xc58   : > { %p46_p10 = scmp.ge.s32.totalorder %s3231_s30, 4   ;;  %s3235_s2 = smov %s3232_s23 }
 0xc5a   :  { %48 = sbr.rel (!%p46_p10) target bundleno = 29 (0x1d), region = 217 }
 0xc61   :  { %1756 = vsyncpa [#allocation3], 1 }
 0xc62   :  { %1758 = vsyncpa [#allocation3 + $0x1], 1 }
 0xc63   :  { %1759 = vsyncpa [#allocation6], 1 }
 0xc64   :  { %1761 = vsyncpa [#allocation6 + $0x1], 1 }
 0xc65   :  { %1762 = vsyncpa [#allocation9], 1 }
 0xc66   :  { %1763 = vsyncpa [#allocation4], 1 }
 0xc67   :  { %1765 = vsyncpa [#allocation4 + $0x1], 1 }
 0xc68   :  { %1766 = vsyncpa [#allocation13], 1 }
 0xc69   :  { %1768 = vsyncpa [#allocation13 + $0x1], 1 }

</bundles_post_ra>
